<compile_context>
chip_gen: v7x
topology: tpu7x:2x2x1
jax: 0.10.0
libtpu: 0.0.40
codegen_flags: <defaults>
</compile_context>

<pallas_src>
import math
import functools

import jax
import jax.numpy as jnp
from jax import lax
from jax.experimental import pallas as pl
from jax.experimental.pallas import tpu as pltpu


# ---------------------------------------------------------------------------
# Symbolic primitive functions (JAX mirrors of the PyTorch function objects
# that expose `.n_inputs` and `.torch(...)`).  `is_linear` marks functions
# whose contribution to the final sum is just a sum of their raw inputs.
# ---------------------------------------------------------------------------
class Identity:
    n_inputs = 1
    is_linear = True
    @staticmethod
    def fn(x):
        return x


class Sin:
    n_inputs = 1
    is_linear = False
    @staticmethod
    def fn(x):
        return jnp.sin(x)


class Cos:
    n_inputs = 1
    is_linear = False
    @staticmethod
    def fn(x):
        return jnp.cos(x)


class Product:
    n_inputs = 2
    is_linear = False
    @staticmethod
    def fn(a, b):
        return a * b


class Plus:
    n_inputs = 2
    is_linear = True      # a + b -> just select both rows of z
    @staticmethod
    def fn(a, b):
        return a + b


FUNCTIONS = (Identity, Sin, Cos, Product, Plus)

_VMEM_LIMIT = 48 * 1024 * 1024   # <= 64 MiB physical on v7x; fine on v5e/v6e
_SMALL_B = 256                   # below this, Pallas dispatch dominates


def _ceil_to(a, m):
    return -(-a // m) * m


# ---------------------------------------------------------------------------
# Static classification of the function list -> row indices for the kernel.
# ---------------------------------------------------------------------------
def _classify(functions):
    single = [f for f in functions if f.n_inputs == 1]
    double = [f for f in functions if f.n_inputs == 2]
    n_inputs_func = len(single) + 2 * len(double)
    linear_rows, single_rows_ops, double_rows_ops = [], [], []
    i_in = 0
    for f in single:
        if getattr(f, "is_linear", False):          # Identity
            linear_rows.append(i_in)
        else:
            single_rows_ops.append((i_in, f.fn))
        i_in += 1
    for f in double:
        if getattr(f, "is_linear", False):          # Plus: z[i] + z[i+1]
            linear_rows.extend([i_in, i_in + 1])
        else:
            double_rows_ops.append((i_in, f.fn))
        i_in += 2
    return (n_inputs_func, tuple(linear_rows),
            tuple(single_rows_ops), tuple(double_rows_ops))


# ---------------------------------------------------------------------------
# Kernel: one batch tile.
#   x_ref  : (TB, K)    natural sample-major layout (no wrapper transpose)
#   w2_ref : (2F, K)    rows [0,F): W^T padded; rows [F,2F): shifted columns
#                       (row j holds original column j+1) -- one MXU operand.
#   o_ref  : (1, TB)    per-sample sums (lane-dense, unmasked stores)
# ---------------------------------------------------------------------------
def _symbolic_kernel(x_ref, w2_ref, o_ref, *, f_pad, linear_rows,
                     single_rows_ops, double_rows_ops):
    x = x_ref[...]                                            # (TB, K)
    # Contract K of both operands: (2F, K) x (TB, K) -> (2F, TB).
    # Samples stay on the lane axis; one MXU push for z and z_shift together.
    r = lax.dot_general(w2_ref[...], x, (((1,), (1,)), ((), ())),
                        preferred_element_type=jnp.float32)   # (2F, TB)
    z = r[:f_pad]                                             # (F, TB)
    zs = r[f_pad:]                                            # (F, TB) col j+1

    row = lax.broadcasted_iota(jnp.int32, z.shape, 0)

    # Linear pass-through rows (Identity, both halves of Plus): one select.
    if linear_rows:
        lin_mask = row == linear_rows[0]
        for r_idx in linear_rows[1:]:
            lin_mask = lin_mask | (row == r_idx)
        contrib = jnp.where(lin_mask, z, 0.0)
    else:
        contrib = jnp.zeros_like(z)
    for r_idx, op in single_rows_ops:          # sin / cos -> EUP, whole-vreg
        contrib = contrib + jnp.where(row == r_idx, op(z), 0.0)
    for r_idx, op in double_rows_ops:          # product etc.
        contrib = contrib + jnp.where(row == r_idx, op(z, zs), 0.0)

    # Rows >= n_inputs_func and the "second halves" of pairs are never
    # selected, so padding contributes exactly zero to the sum.
    o_ref[...] = jnp.sum(contrib, axis=0, keepdims=True)      # (1, TB)


def _prepare_weights(w, n_inputs_func):
    """Stack W^T and the column-shifted W^T into one padded (2F, K) matrix."""
    input_size = w.shape[0]
    f_pad = max(8, _ceil_to(n_inputs_func, 8))
    w2 = jnp.zeros((2 * f_pad, input_size), jnp.float32)
    w2 = w2.at[:n_inputs_func].set(w.T.astype(jnp.float32))
    if n_inputs_func > 1:
        w2 = w2.at[f_pad:f_pad + n_inputs_func - 1].set(
            w.T[1:].astype(jnp.float32))
    return w2, f_pad


def _select_tile(b, tile_b):
    """Pick (b_pad, tb).  Keep >=4 grid steps when splitting (2 TCs on v7x)."""
    if b <= tile_b:
        b_pad = max(128, _ceil_to(b, 128))
        return b_pad, b_pad                 # single tile, no grid
    tb = tile_b
    while tb > 512 and pl.cdiv(b, tb) < 4:
        tb //= 2
    tb = max(128, _ceil_to(tb, 128))
    return _ceil_to(b, tb), tb


# ---------------------------------------------------------------------------
# Batched forward: x (B, input_size) -> per-sample sums (B,)
# ---------------------------------------------------------------------------
@functools.partial(jax.jit, static_argnums=(2, 3))
def _forward_batched_impl(x, w, functions, tile_b):
    n_inputs_func, linear_rows, single_rows_ops, double_rows_ops = \
        _classify(functions)
    b, input_size = x.shape
    assert w.shape == (input_size, n_inputs_func)
    x = x.astype(jnp.float32)

    if b < _SMALL_B:
        # Dispatch-dominated regime: plain fused XLA path, same semantics.
        z = x @ w.astype(jnp.float32)                      # (B, n_inputs_func)
        total = jnp.zeros((b,), jnp.float32)
        for r_idx in linear_rows:
            total = total + z[:, r_idx]
        for r_idx, op in single_rows_ops:
            total = total + op(z[:, r_idx])
        for r_idx, op in double_rows_ops:
            total = total + op(z[:, r_idx], z[:, r_idx + 1])
        return total

    w2, f_pad = _prepare_weights(w, n_inputs_func)
    b_pad, tb = _select_tile(b, tile_b)
    if b_pad != b:
        x = jnp.pad(x, ((0, b_pad - b), (0, 0)))           # zero rows, sliced off

    kernel = functools.partial(
        _symbolic_kernel, f_pad=f_pad, linear_rows=linear_rows,
        single_rows_ops=single_rows_ops, double_rows_ops=double_rows_ops)
    out_shape = jax.ShapeDtypeStruct((1, b_pad), jnp.float32)
    num_tiles = b_pad // tb

    if num_tiles == 1:
        out = pl.pallas_call(
            kernel,
            out_shape=out_shape,
            in_specs=[pl.BlockSpec(memory_space=pltpu.MemorySpace.VMEM)] * 2,
            out_specs=pl.BlockSpec(memory_space=pltpu.MemorySpace.VMEM),
            compiler_params=pltpu.CompilerParams(
                vmem_limit_bytes=_VMEM_LIMIT),
        )(x, w2)
    else:
        out = pl.pallas_call(
            kernel,
            out_shape=out_shape,
            grid=(num_tiles,),
            in_specs=[
                pl.BlockSpec((tb, input_size), lambda i: (i, 0)),        # x
                pl.BlockSpec((2 * f_pad, input_size), lambda i: (0, 0)),  # w2
            ],
            out_specs=pl.BlockSpec((1, tb), lambda i: (0, i)),
            compiler_params=pltpu.CompilerParams(
                dimension_semantics=("parallel",),    # shards batch on v7x TCs
                vmem_limit_bytes=_VMEM_LIMIT),
        )(x, w2)

    return out[0, :b]


def symbolic_net_forward_batched(x, w, functions, *, tile_b=32768):
    return _forward_batched_impl(x, w, tuple(functions), int(tile_b))


# Single-sample forward (matches the PyTorch per-sample SymbolicNet.forward).
def symbolic_net_forward(x, w, functions):
    return symbolic_net_forward_batched(x.reshape(1, -1), w, functions)[0]


# ---------------------------------------------------------------------------
# Pure-JAX reference (mirrors the PyTorch forward exactly) for validation.
# ---------------------------------------------------------------------------
def symbolic_net_ref(x, w, functions):
    single = [f for f in functions if f.n_inputs == 1]
    double = [f for f in functions if f.n_inputs == 2]
    z = jnp.dot(x, w)
    outs = []
    i_in = 0
    for f in single:
        outs.append(f.fn(z[i_in]))
        i_in += 1
    for f in double:
        outs.append(f.fn(z[i_in], z[i_in + 1]))
        i_in += 2
    return jnp.sum(jnp.stack(outs))


# TODO(synk): train_n_epochs (Adam + MSE training loop) is host-side training
# logic, not part of the forward pass, and is not translated to Pallas.

if __name__ == "__main__":
    key = jax.random.PRNGKey(0)
    kx, kw, ks, kg = jax.random.split(key, 4)

    input_size = 32
    hidden_size = 32   # unused by the forward pass (as in the PyTorch module)
    output_size = 1    # unused by the forward pass (as in the PyTorch module)
    functions = FUNCTIONS

    n_single = sum(1 for f in functions if f.n_inputs == 1)
    n_double = sum(1 for f in functions if f.n_inputs == 2)
    n_inputs_func = n_single + 2 * n_double

    # Deterministic init matching nn.init.kaiming_uniform_(a=sqrt(5)):
    # bound = 1 / sqrt(fan_in), fan_in = n_inputs_func.
    bound = 1.0 / math.sqrt(n_inputs_func)
    w = jax.random.uniform(kw, (input_size, n_inputs_func), jnp.float32,
                           -bound, bound)

    # --- batched path, single-tile Pallas kernel (with batch padding) -------
    B1 = 1000
    xb = jax.random.normal(kx, (B1, input_size), jnp.float32)
    out_b = symbolic_net_forward_batched(xb, w, functions)
    jax.block_until_ready(out_b)
    assert out_b.shape == (B1,)
    ref_b = jax.vmap(lambda xv: symbolic_net_ref(xv, w, functions))(xb)
    assert jnp.allclose(out_b, ref_b, rtol=1e-4, atol=1e-4), (out_b[:4], ref_b[:4])

    # --- batched path, multi-tile grid (exercises pipelining / parallel) ----
    B2 = 2048
    xg = jax.random.normal(kg, (B2, input_size), jnp.float32)
    out_g = symbolic_net_forward_batched(xg, w, functions, tile_b=512)
    jax.block_until_ready(out_g)
    ref_g = jax.vmap(lambda xv: symbolic_net_ref(xv, w, functions))(xg)
    assert jnp.allclose(out_g, ref_g, rtol=1e-4, atol=1e-4), (out_g[:4], ref_g[:4])

    # --- single-sample path (tiny-B fallback; per-sample PyTorch forward) ---
    x1 = jax.random.normal(ks, (input_size,), jnp.float32)
    out_1 = symbolic_net_forward(x1, w, functions)
    jax.block_until_ready(out_1)
    ref_1 = symbolic_net_ref(x1, w, functions)
    assert jnp.allclose(out_1, ref_1, rtol=1e-4, atol=1e-4), (out_1, ref_1)

    print("KERNEL_OK")
</pallas_src>

<mosaic_0001>
module attributes {stable_mosaic.version = 11 : i64} {
  func.func @_symbolic_kernel(%arg0: memref<1024x32xf32, #tpu.memory_space<vmem>>, %arg1: memref<16x32xf32, #tpu.memory_space<vmem>>, %arg2: memref<1x1024xf32, #tpu.memory_space<vmem>>) attributes {dimension_semantics = [], scalar_prefetch = 0 : i64, scratch_operands = 0 : i64, tpu.core_type = #tpu.core_type<tc>} {
    %c0 = arith.constant 0 : index
    %c0_0 = arith.constant 0 : index
    %0 = vector.load %arg0[%c0, %c0_0] : memref<1024x32xf32, #tpu.memory_space<vmem>>, vector<1024x32xf32>
    %c0_1 = arith.constant 0 : index
    %c0_2 = arith.constant 0 : index
    %1 = vector.load %arg1[%c0_1, %c0_2] : memref<16x32xf32, #tpu.memory_space<vmem>>, vector<16x32xf32>
    %cst = arith.constant dense<0.000000e+00> : vector<16x1024xf32>
    %2 = tpu.matmul %1, %0, %cst {dimension_numbers = #tpu.dot_dimension_numbers<[1], [1], [0], [0], [0, 0, 1, 0], [], []>} : vector<16x32xf32>, vector<1024x32xf32>, vector<16x1024xf32> -> vector<16x1024xf32>
    %3 = vector.extract_strided_slice %2 {offsets = [0, 0], sizes = [8, 1024], strides = [1, 1]} : vector<16x1024xf32> to vector<8x1024xf32>
    %4 = vector.extract_strided_slice %2 {offsets = [8, 0], sizes = [8, 1024], strides = [1, 1]} : vector<16x1024xf32> to vector<8x1024xf32>
    %5 = tpu.iota {dimensions = array<i32: 0>} : vector<8x1024xi32>
    %c0_i32 = arith.constant 0 : i32
    %6 = vector.broadcast %c0_i32 : i32 to vector<8x1024xi32>
    %7 = arith.cmpi eq, %5, %6 : vector<8x1024xi32>
    %c5_i32 = arith.constant 5 : i32
    %8 = vector.broadcast %c5_i32 : i32 to vector<8x1024xi32>
    %9 = arith.cmpi eq, %5, %8 : vector<8x1024xi32>
    %10 = arith.ori %7, %9 : vector<8x1024xi1>
    %c6_i32 = arith.constant 6 : i32
    %11 = vector.broadcast %c6_i32 : i32 to vector<8x1024xi32>
    %12 = arith.cmpi eq, %5, %11 : vector<8x1024xi32>
    %13 = arith.ori %10, %12 : vector<8x1024xi1>
    %cst_3 = arith.constant 0.000000e+00 : f32
    %14 = vector.broadcast %cst_3 : f32 to vector<8x1024xf32>
    %15 = arith.select %13, %3, %14 : vector<8x1024xi1>, vector<8x1024xf32>
    %c1_i32 = arith.constant 1 : i32
    %16 = vector.broadcast %c1_i32 : i32 to vector<8x1024xi32>
    %17 = arith.cmpi eq, %5, %16 : vector<8x1024xi32>
    %18 = math.sin %3 : vector<8x1024xf32>
    %cst_4 = arith.constant 0.000000e+00 : f32
    %19 = vector.broadcast %cst_4 : f32 to vector<8x1024xf32>
    %20 = arith.select %17, %18, %19 : vector<8x1024xi1>, vector<8x1024xf32>
    %21 = arith.addf %15, %20 : vector<8x1024xf32>
    %c2_i32 = arith.constant 2 : i32
    %22 = vector.broadcast %c2_i32 : i32 to vector<8x1024xi32>
    %23 = arith.cmpi eq, %5, %22 : vector<8x1024xi32>
    %24 = math.cos %3 : vector<8x1024xf32>
    %cst_5 = arith.constant 0.000000e+00 : f32
    %25 = vector.broadcast %cst_5 : f32 to vector<8x1024xf32>
    %26 = arith.select %23, %24, %25 : vector<8x1024xi1>, vector<8x1024xf32>
    %27 = arith.addf %21, %26 : vector<8x1024xf32>
    %c3_i32 = arith.constant 3 : i32
    %28 = vector.broadcast %c3_i32 : i32 to vector<8x1024xi32>
    %29 = arith.cmpi eq, %5, %28 : vector<8x1024xi32>
    %30 = arith.mulf %3, %4 : vector<8x1024xf32>
    %cst_6 = arith.constant 0.000000e+00 : f32
    %31 = vector.broadcast %cst_6 : f32 to vector<8x1024xf32>
    %32 = arith.select %29, %30, %31 : vector<8x1024xi1>, vector<8x1024xf32>
    %33 = arith.addf %27, %32 : vector<8x1024xf32>
    %cst_7 = arith.constant dense<0.000000e+00> : vector<1024xf32>
    %34 = vector.multi_reduction <add>, %33, %cst_7 [0] : vector<8x1024xf32> to vector<1024xf32>
    %35 = vector.shape_cast %34 : vector<1024xf32> to vector<1x1024xf32>
    %c0_8 = arith.constant 0 : index
    %c0_9 = arith.constant 0 : index
    %36 = vector.load %arg2[%c0_8, %c0_9] : memref<1x1024xf32, #tpu.memory_space<vmem>>, vector<1x1024xf32>
    tpu.vector_store %arg2[%c0_8, %c0_9], %35 {strides = array<i32>} : memref<1x1024xf32, #tpu.memory_space<vmem>>, vector<1x1024xf32>,
    return
  }
}

</mosaic_0001>

<bundles_post_ra>
// kernel: _forward_batched_impl.1
= control target key start
LH: loop header
LB: loop body
LE: loop exit
PB: predicated region body
PF: predicated region fallthrough
CT: control target
= control target key end

     0   :  { %vm142_vm0 = vcmask 261120   ;;  %s4775_s0 = inlined_call_operand.vmem [shape: f32[1024,32], index: 0, kind: input, shape index: {}]   ;;  %s4776_s1 = inlined_call_operand.vmem [shape: f32[16,32], index: 1, kind: input, shape index: {}]   ;;  %s4777_s2 = inlined_call_operand.hbm [shape: f32[1,1024], index: 2, kind: output, shape index: {}]  }
   0x1   :  { %v28_v0 = vld [vmem:[%s4775_s0 + $0x80] sm:$0xff]  ;;  %v29_v1 = vld [vmem:[%s4775_s0 + $0x88] sm:$0xff]  ;;  %vm3358_vm1 = vmpackc.low %vm142_vm0, %vm142_vm0 }
   0x2   :  { %v60_v2 = vld [vmem:[%s4775_s0 + $0x180] sm:$0xff]  ;;  %v3036_v3 = vpack.c.bf16 %v29_v1, %v28_v0  ;;  %v61_v5 = vld [vmem:[%s4775_s0 + $0x188] sm:$0xff]  ;;  %v30_v13 = vld [vmem:[%s4775_s0 + $0x90] sm:$0xff] }
   0x3   :  { %v12_v6 = vld [vmem:[%s4775_s0] sm:$0xff]  ;;  %v3084_v7 = vpack.c.bf16 %v61_v5, %v60_v2  ;;  %v13_v8 = vld [vmem:[%s4775_s0 + $0x8] sm:$0xff]  ;;  %v31_v14 = vld [vmem:[%s4775_s0 + $0x98] sm:$0xff] }
   0x4   :  { %v44_v9 = vld [vmem:[%s4775_s0 + $0x100] sm:$0xff]  ;;  %v45_v10 = vld [vmem:[%s4775_s0 + $0x108] sm:$0xff]  ;;  %3038 = vmatprep.subr.msk.bf16.mxu0 %vm3358_vm1, %v3036_v3  ;;  %v3039_v11 = vpack.c.bf16 %v13_v8, %v12_v6  ;;  %v62_v15 = vld [vmem:[%s4775_s0 + $0x190] sm:$0xff]  ;;  %v3042_v16 = vpack.c.bf16 %v31_v14, %v30_v13 }
   0x5   :  { %v3087_v12 = vpack.c.bf16 %v45_v10, %v44_v9  ;;  %3086 = vmatprep.subr.msk.bf16.mxu1 %vm3358_vm1, %v3084_v7  ;;  %v63_v17 = vld [vmem:[%s4775_s0 + $0x198] sm:$0xff]  ;;  %v14_v19 = vld [vmem:[%s4775_s0 + $0x10] sm:$0xff]  ;;  %v32_v23 = vld [vmem:[%s4775_s0 + $0xa0] sm:$0xff] }
   0x6   :  { %3041 = vmatpush3.bf16.xpose.msk.msra.mxu0 %vm3358_vm1, %v3039_v11  ;;  %v3090_v18 = vpack.c.bf16 %v63_v17, %v62_v15  ;;  %v15_v20 = vld [vmem:[%s4775_s0 + $0x18] sm:$0xff]  ;;  %v46_v21 = vld [vmem:[%s4775_s0 + $0x110] sm:$0xff]  ;;  %v33_v24 = vld [vmem:[%s4775_s0 + $0xa8] sm:$0xff] }
   0x7   :  { %3089 = vmatpush3.bf16.xpose.msk.msra.mxu1 %vm3358_vm1, %v3087_v12  ;;  %3044 = vmatprep.subr.msk.bf16.mxu0 %vm3358_vm1, %v3042_v16  ;;  %v47_v22 = vld [vmem:[%s4775_s0 + $0x118] sm:$0xff]  ;;  %v64_v25 = vld [vmem:[%s4775_s0 + $0x1a0] sm:$0xff]  ;;  %v65_v26 = vld [vmem:[%s4775_s0 + $0x1a8] sm:$0xff]  ;;  %v3045_v27 = vpack.c.bf16 %v15_v20, %v14_v19  ;;  %v3048_v29 = vpack.c.bf16 %v33_v24, %v32_v23 }
   0x8   :  { %3092 = vmatprep.subr.msk.bf16.mxu1 %vm3358_vm1, %v3090_v18  ;;  %v3093_v28 = vpack.c.bf16 %v47_v22, %v46_v21  ;;  %v3096_v30 = vpack.c.bf16 %v65_v26, %v64_v25  ;;  %v16_v31 = vld [vmem:[%s4775_s0 + $0x20] sm:$0xff]  ;;  %v17_v32 = vld [vmem:[%s4775_s0 + $0x28] sm:$0xff]  ;;  %v34_v35 = vld [vmem:[%s4775_s0 + $0xb0] sm:$0xff] }
   0x9   :  { %v48_v33 = vld [vmem:[%s4775_s0 + $0x120] sm:$0xff]  ;;  %v49_v34 = vld [vmem:[%s4775_s0 + $0x128] sm:$0xff]  ;;  %v35_v36 = vld [vmem:[%s4775_s0 + $0xb8] sm:$0xff]  ;;  %v3051_v39 = vpack.c.bf16 %v17_v32, %v16_v31 }
   0xa   :  { %v66_v37 = vld [vmem:[%s4775_s0 + $0x1b0] sm:$0xff]  ;;  %v67_v38 = vld [vmem:[%s4775_s0 + $0x1b8] sm:$0xff]  ;;  %v3099_v40 = vpack.c.bf16 %v49_v34, %v48_v33  ;;  %v3054_v41 = vpack.c.bf16 %v35_v36, %v34_v35  ;;  %v3470_v45 = vld [vmem:[%s4776_s1] sm:$0xff] }
   0xb   :  { %v3102_v42 = vpack.c.bf16 %v67_v38, %v66_v37  ;;  %v18_v43 = vld [vmem:[%s4775_s0 + $0x30] sm:$0xff]  ;;  %v19_v44 = vld [vmem:[%s4775_s0 + $0x38] sm:$0xff]  ;;  %v36_v48 = vld [vmem:[%s4775_s0 + $0xc0] sm:$0xff]  ;;  %2924 = vmatprep.mubr.msk.f32.mxu0 %vm142_vm0, %v3470_v45  ;;  %2960 = vmatprep.mubr.msk.f32.mxu1 %vm142_vm0, %v3470_v45 }
   0xc   :  { %v50_v46 = vld [vmem:[%s4775_s0 + $0x130] sm:$0xff]  ;;  %v51_v47 = vld [vmem:[%s4775_s0 + $0x138] sm:$0xff]  ;;  %v37_v49 = vld [vmem:[%s4775_s0 + $0xc8] sm:$0xff]  ;;  %v3057_v52 = vpack.c.bf16 %v19_v44, %v18_v43 }
   0xd   :  { %v68_v50 = vld [vmem:[%s4775_s0 + $0x1c0] sm:$0xff]  ;;  %v69_v51 = vld [vmem:[%s4775_s0 + $0x1c8] sm:$0xff]  ;;  %v3105_v53 = vpack.c.bf16 %v51_v47, %v50_v46  ;;  %v3060_v54 = vpack.c.bf16 %v37_v49, %v36_v48  ;;  %v38_v60 = vld [vmem:[%s4775_s0 + $0xd0] sm:$0xff] }
   0xe   :  { %3047 = vmatpush3.bf16.xpose.msk.msra.mxu0 %vm3358_vm1, %v3045_v27  ;;  %v3108_v55 = vpack.c.bf16 %v69_v51, %v68_v50  ;;  %v20_v56 = vld [vmem:[%s4775_s0 + $0x40] sm:$0xff]  ;;  %v21_v57 = vld [vmem:[%s4775_s0 + $0x48] sm:$0xff]  ;;  %v39_v61 = vld [vmem:[%s4775_s0 + $0xd8] sm:$0xff] }
   0xf   :  { %3095 = vmatpush3.bf16.xpose.msk.msra.mxu1 %vm3358_vm1, %v3093_v28  ;;  %3050 = vmatprep.subr.msk.bf16.mxu0 %vm3358_vm1, %v3048_v29  ;;  %v52_v58 = vld [vmem:[%s4775_s0 + $0x140] sm:$0xff]  ;;  %v53_v59 = vld [vmem:[%s4775_s0 + $0x148] sm:$0xff]  ;;  %v70_v62 = vld [vmem:[%s4775_s0 + $0x1d0] sm:$0xff]  ;;  %v3063_v0 = vpack.c.bf16 %v21_v57, %v20_v56  ;;  %v3066_v2 = vpack.c.bf16 %v39_v61, %v38_v60 }
  0x10   :  { %3098 = vmatprep.subr.msk.bf16.mxu1 %vm3358_vm1, %v3096_v30  ;;  %v71_v63 = vld [vmem:[%s4775_s0 + $0x1d8] sm:$0xff]  ;;  %v3111_v1 = vpack.c.bf16 %v53_v59, %v52_v58  ;;  %v22_v5 = vld [vmem:[%s4775_s0 + $0x50] sm:$0xff]  ;;  %v40_v9 = vld [vmem:[%s4775_s0 + $0xe0] sm:$0xff] }
  0x11   :  { %v3114_v3 = vpack.c.bf16 %v71_v63, %v70_v62  ;;  %v23_v6 = vld [vmem:[%s4775_s0 + $0x58] sm:$0xff]  ;;  %v54_v7 = vld [vmem:[%s4775_s0 + $0x150] sm:$0xff]  ;;  %v41_v10 = vld [vmem:[%s4775_s0 + $0xe8] sm:$0xff] }
  0x12   :  { %v55_v8 = vld [vmem:[%s4775_s0 + $0x158] sm:$0xff]  ;;  %v72_v11 = vld [vmem:[%s4775_s0 + $0x1e0] sm:$0xff]  ;;  %v73_v12 = vld [vmem:[%s4775_s0 + $0x1e8] sm:$0xff]  ;;  %v3069_v13 = vpack.c.bf16 %v23_v6, %v22_v5  ;;  %v3072_v15 = vpack.c.bf16 %v41_v10, %v40_v9 }
  0x13   :  { %v3117_v14 = vpack.c.bf16 %v55_v8, %v54_v7  ;;  %v3120_v16 = vpack.c.bf16 %v73_v12, %v72_v11 }
  0x16   :  { %3053 = vmatpush3.bf16.xpose.msk.msra.mxu0 %vm3358_vm1, %v3051_v39 }
  0x17   :  { %3101 = vmatpush3.bf16.xpose.msk.msra.mxu1 %vm3358_vm1, %v3099_v40  ;;  %3056 = vmatprep.subr.msk.bf16.mxu0 %vm3358_vm1, %v3054_v41 }
  0x18   :  { %3104 = vmatprep.subr.msk.bf16.mxu1 %vm3358_vm1, %v3102_v42 }
  0x1e   :  { %3059 = vmatpush3.bf16.xpose.msk.msra.mxu0 %vm3358_vm1, %v3057_v52 }
  0x1f   :  { %3107 = vmatpush3.bf16.xpose.msk.msra.mxu1 %vm3358_vm1, %v3105_v53  ;;  %3062 = vmatprep.subr.msk.bf16.mxu0 %vm3358_vm1, %v3060_v54 }
  0x20   :  { %3110 = vmatprep.subr.msk.bf16.mxu1 %vm3358_vm1, %v3108_v55 }
  0x26   :  { %3065 = vmatpush3.bf16.xpose.msk.msra.mxu0 %vm3358_vm1, %v3063_v0 }
  0x27   :  { %3113 = vmatpush3.bf16.xpose.msk.msra.mxu1 %vm3358_vm1, %v3111_v1  ;;  %3068 = vmatprep.subr.msk.bf16.mxu0 %vm3358_vm1, %v3066_v2 }
  0x28   :  { %3116 = vmatprep.subr.msk.bf16.mxu1 %vm3358_vm1, %v3114_v3 }
  0x29   :  { %7 = vsyncpa [#allocation3], 0  ;;  %v24_v17 = vld [vmem:[%s4775_s0 + $0x60] sm:$0xff]  ;;  %v25_v18 = vld [vmem:[%s4775_s0 + $0x68] sm:$0xff] }
  0x2a   :  { %v56_v19 = vld [vmem:[%s4775_s0 + $0x160] sm:$0xff]  ;;  %v57_v20 = vld [vmem:[%s4775_s0 + $0x168] sm:$0xff]  ;;  %v42_v21 = vld [vmem:[%s4775_s0 + $0xf0] sm:$0xff]  ;;  %v3075_v25 = vpack.c.bf16 %v25_v18, %v24_v17 }
  0x2b   :  { %v43_v22 = vld [vmem:[%s4775_s0 + $0xf8] sm:$0xff]  ;;  %v74_v23 = vld [vmem:[%s4775_s0 + $0x1f0] sm:$0xff]  ;;  %v3123_v26 = vpack.c.bf16 %v57_v20, %v56_v19  ;;  %v92_v33 = vld [vmem:[%s4775_s0 + $0x280] sm:$0xff] }
  0x2c   :  { %v75_v24 = vld [vmem:[%s4775_s0 + $0x1f8] sm:$0xff]  ;;  %v3078_v27 = vpack.c.bf16 %v43_v22, %v42_v21  ;;  %v26_v29 = vld [vmem:[%s4775_s0 + $0x70] sm:$0xff]  ;;  %v93_v34 = vld [vmem:[%s4775_s0 + $0x288] sm:$0xff] }
  0x2d   :  { %v3126_v28 = vpack.c.bf16 %v75_v24, %v74_v23  ;;  %v27_v30 = vld [vmem:[%s4775_s0 + $0x78] sm:$0xff]  ;;  %v58_v31 = vld [vmem:[%s4775_s0 + $0x170] sm:$0xff]  ;;  %v124_v35 = vld [vmem:[%s4775_s0 + $0x380] sm:$0xff]  ;;  %v3132_v39 = vpack.c.bf16 %v93_v34, %v92_v33 }
  0x2e   :  { %3071 = vmatpush3.bf16.xpose.msk.msra.mxu0 %vm3358_vm1, %v3069_v13  ;;  %v59_v32 = vld [vmem:[%s4775_s0 + $0x178] sm:$0xff]  ;;  %v125_v36 = vld [vmem:[%s4775_s0 + $0x388] sm:$0xff]  ;;  %v3081_v37 = vpack.c.bf16 %v27_v30, %v26_v29  ;;  %v76_v41 = vld [vmem:[%s4775_s0 + $0x200] sm:$0xff] }
  0x2f   :  { %3119 = vmatpush3.bf16.xpose.msk.msra.mxu1 %vm3358_vm1, %v3117_v14  ;;  %3074 = vmatprep.subr.msk.bf16.mxu0 %vm3358_vm1, %v3072_v15  ;;  %v3129_v38 = vpack.c.bf16 %v59_v32, %v58_v31  ;;  %v3180_v40 = vpack.c.bf16 %v125_v36, %v124_v35  ;;  %v77_v42 = vld [vmem:[%s4775_s0 + $0x208] sm:$0xff]  ;;  %v108_v43 = vld [vmem:[%s4775_s0 + $0x300] sm:$0xff]  ;;  %v94_v46 = vld [vmem:[%s4775_s0 + $0x290] sm:$0xff] }
  0x30   :  { %3122 = vmatprep.subr.msk.bf16.mxu1 %vm3358_vm1, %v3120_v16  ;;  %v109_v44 = vld [vmem:[%s4775_s0 + $0x308] sm:$0xff]  ;;  %v95_v47 = vld [vmem:[%s4775_s0 + $0x298] sm:$0xff]  ;;  %v126_v48 = vld [vmem:[%s4775_s0 + $0x390] sm:$0xff]  ;;  %v3135_v50 = vpack.c.bf16 %v77_v42, %v76_v41 }
  0x31   :  { %v127_v49 = vld [vmem:[%s4775_s0 + $0x398] sm:$0xff]  ;;  %v3183_v51 = vpack.c.bf16 %v109_v44, %v108_v43  ;;  %v3661_v52 = vld [vmem:[%s4776_s1 + $0x8] sm:$0xff]  ;;  %v3138_v53 = vpack.c.bf16 %v95_v47, %v94_v46  ;;  %v78_v55 = vld [vmem:[%s4775_s0 + $0x210] sm:$0xff] }
  0x32   :  { %v3186_v54 = vpack.c.bf16 %v127_v49, %v126_v48  ;;  %v79_v56 = vld [vmem:[%s4775_s0 + $0x218] sm:$0xff]  ;;  %v110_v57 = vld [vmem:[%s4775_s0 + $0x310] sm:$0xff]  ;;  %v96_v59 = vld [vmem:[%s4775_s0 + $0x2a0] sm:$0xff] }
  0x33   :  { %v111_v58 = vld [vmem:[%s4775_s0 + $0x318] sm:$0xff]  ;;  %v97_v60 = vld [vmem:[%s4775_s0 + $0x2a8] sm:$0xff]  ;;  %v128_v61 = vld [vmem:[%s4775_s0 + $0x3a0] sm:$0xff]  ;;  %v3141_v63 = vpack.c.bf16 %v79_v56, %v78_v55 }
  0x34   :  { %v129_v62 = vld [vmem:[%s4775_s0 + $0x3a8] sm:$0xff]  ;;  %v3189_v0 = vpack.c.bf16 %v111_v58, %v110_v57  ;;  %v3144_v1 = vpack.c.bf16 %v97_v60, %v96_v59  ;;  %v80_v3 = vld [vmem:[%s4775_s0 + $0x220] sm:$0xff]  ;;  %v98_v8 = vld [vmem:[%s4775_s0 + $0x2b0] sm:$0xff] }
  0x35   :  { %v3192_v2 = vpack.c.bf16 %v129_v62, %v128_v61  ;;  %v81_v5 = vld [vmem:[%s4775_s0 + $0x228] sm:$0xff]  ;;  %v112_v6 = vld [vmem:[%s4775_s0 + $0x320] sm:$0xff]  ;;  %v99_v9 = vld [vmem:[%s4775_s0 + $0x2b8] sm:$0xff] }
  0x36   :  { %3077 = vmatpush3.bf16.xpose.msk.msra.mxu0 %vm3358_vm1, %v3075_v25  ;;  %v113_v7 = vld [vmem:[%s4775_s0 + $0x328] sm:$0xff]  ;;  %v130_v10 = vld [vmem:[%s4775_s0 + $0x3b0] sm:$0xff]  ;;  %v131_v11 = vld [vmem:[%s4775_s0 + $0x3b8] sm:$0xff]  ;;  %v3147_v12 = vpack.c.bf16 %v81_v5, %v80_v3  ;;  %v3150_v14 = vpack.c.bf16 %v99_v9, %v98_v8 }
  0x37   :  { %3125 = vmatpush3.bf16.xpose.msk.msra.mxu1 %vm3358_vm1, %v3123_v26  ;;  %3080 = vmatprep.subr.msk.bf16.mxu0 %vm3358_vm1, %v3078_v27  ;;  %v3195_v13 = vpack.c.bf16 %v113_v7, %v112_v6  ;;  %v3198_v15 = vpack.c.bf16 %v131_v11, %v130_v10  ;;  %v82_v16 = vld [vmem:[%s4775_s0 + $0x230] sm:$0xff]  ;;  %v83_v17 = vld [vmem:[%s4775_s0 + $0x238] sm:$0xff]  ;;  %v100_v20 = vld [vmem:[%s4775_s0 + $0x2c0] sm:$0xff] }
  0x38   :  { %3128 = vmatprep.subr.msk.bf16.mxu1 %vm3358_vm1, %v3126_v28  ;;  %v114_v18 = vld [vmem:[%s4775_s0 + $0x330] sm:$0xff]  ;;  %v115_v19 = vld [vmem:[%s4775_s0 + $0x338] sm:$0xff]  ;;  %v101_v21 = vld [vmem:[%s4775_s0 + $0x2c8] sm:$0xff]  ;;  %v3153_v24 = vpack.c.bf16 %v83_v17, %v82_v16 }
  0x39   :  { %v132_v22 = vld [vmem:[%s4775_s0 + $0x3c0] sm:$0xff]  ;;  %v133_v23 = vld [vmem:[%s4775_s0 + $0x3c8] sm:$0xff]  ;;  %v3201_v25 = vpack.c.bf16 %v115_v19, %v114_v18  ;;  %v3156_v26 = vpack.c.bf16 %v101_v21, %v100_v20  ;;  %v102_v32 = vld [vmem:[%s4775_s0 + $0x2d0] sm:$0xff] }
  0x3a   :  { %v3204_v27 = vpack.c.bf16 %v133_v23, %v132_v22  ;;  %v84_v28 = vld [vmem:[%s4775_s0 + $0x240] sm:$0xff]  ;;  %v85_v29 = vld [vmem:[%s4775_s0 + $0x248] sm:$0xff]  ;;  %v103_v33 = vld [vmem:[%s4775_s0 + $0x2d8] sm:$0xff]  ;;  %v841_v22 = vlaneseq }
  0x3b   :  { %v116_v30 = vld [vmem:[%s4775_s0 + $0x340] sm:$0xff]  ;;  %v117_v31 = vld [vmem:[%s4775_s0 + $0x348] sm:$0xff]  ;;  %v134_v34 = vld [vmem:[%s4775_s0 + $0x3d0] sm:$0xff]  ;;  %v3159_v36 = vpack.c.bf16 %v85_v29, %v84_v28 }
  0x3c   :  { %v135_v35 = vld [vmem:[%s4775_s0 + $0x3d8] sm:$0xff]  ;;  %v118_v42 = vld [vmem:[%s4775_s0 + $0x350] sm:$0xff]  ;;  %v104_v44 = vld [vmem:[%s4775_s0 + $0x2e0] sm:$0xff] }
  0x3d   :  { %v87_v41 = vld [vmem:[%s4775_s0 + $0x258] sm:$0xff]  ;;  %v105_v46 = vld [vmem:[%s4775_s0 + $0x2e8] sm:$0xff]  ;;  %v136_v47 = vld [vmem:[%s4775_s0 + $0x3e0] sm:$0xff] }
  0x3e   :  { %3083 = vmatpush3.bf16.xpose.msk.msra.mxu0 %vm3358_vm1, %v3081_v37  ;;  %v3207_v37 = vpack.c.bf16 %v117_v31, %v116_v30  ;;  %v119_v43 = vld [vmem:[%s4775_s0 + $0x358] sm:$0xff]  ;;  %v137_v48 = vld [vmem:[%s4775_s0 + $0x3e8] sm:$0xff]  ;;  %v120_v56 = vld [vmem:[%s4775_s0 + $0x360] sm:$0xff] }
  0x3f   :  { %3131 = vmatpush3.bf16.xpose.msk.msra.mxu1 %vm3358_vm1, %v3129_v38  ;;  %3134 = vmatprep.subr.msk.bf16.mxu0 %vm3358_vm1, %v3132_v39  ;;  %v3162_v38 = vpack.c.bf16 %v103_v33, %v102_v32  ;;  %v3210_v39 = vpack.c.bf16 %v135_v35, %v134_v34  ;;  %v89_v55 = vld [vmem:[%s4775_s0 + $0x268] sm:$0xff]  ;;  %v106_v58 = vld [vmem:[%s4775_s0 + $0x2f0] sm:$0xff]  ;;  %v107_v59 = vld [vmem:[%s4775_s0 + $0x2f8] sm:$0xff] }
  0x40   :  { %3182 = vmatprep.subr.msk.bf16.mxu1 %vm3358_vm1, %v3180_v40  ;;  %v86_v40 = vld [vmem:[%s4775_s0 + $0x250] sm:$0xff]  ;;  %v121_v57 = vld [vmem:[%s4775_s0 + $0x368] sm:$0xff]  ;;  %v139_v61 = vld [vmem:[%s4775_s0 + $0x3f8] sm:$0xff] }
  0x41   :  { %v3165_v49 = vpack.c.bf16 %v87_v41, %v86_v40  ;;  %v138_v60 = vld [vmem:[%s4775_s0 + $0x3f0] sm:$0xff]  ;;  %v91_v3 = vld [vmem:[%s4775_s0 + $0x278] sm:$0xff] }
  0x42   :  { %v122_v5 = vld [vmem:[%s4775_s0 + $0x370] sm:$0xff]  ;;  %v123_v6 = vld [vmem:[%s4775_s0 + $0x378] sm:$0xff] }
  0x43   :  { %v3225_v8 = vpack.c.bf16 %v123_v6, %v122_v5  ;;  %v3329_v5 = vmov 1326507024  }
  0x45   :  { %2925 = vmatmul.mubr.msk.f32.vlgmr.msra.gmra.mrb[0].mxu0 %vm142_vm0, %v3470_v45 }
  0x46   :  { %2961 = vmatmul.mubr.msk.f32.vlgmr.msra.gmra.mrb[0].mxu1 %vm142_vm0, %v3470_v45  ;;  %3137 = vmatpush3.bf16.xpose.msk.msra.mxu0 %vm3358_vm1, %v3135_v50  ;;  %v3213_v50 = vpack.c.bf16 %v119_v43, %v118_v42 }
  0x47   :  { %3185 = vmatpush3.bf16.xpose.msk.msra.mxu1 %vm3358_vm1, %v3183_v51  ;;  %2926 = vmatprep.mubr.msk.f32.mxu0 %vm142_vm0, %v3661_v52  ;;  %v3168_v51 = vpack.c.bf16 %v105_v46, %v104_v44 }
  0x48   :  { %2962 = vmatprep.mubr.msk.f32.mxu1 %vm142_vm0, %v3661_v52  ;;  %3140 = vmatprep.subr.msk.bf16.mxu0 %vm3358_vm1, %v3138_v53  ;;  %v3216_v53 = vpack.c.bf16 %v137_v48, %v136_v47 }
  0x49   :  { %3188 = vmatprep.subr.msk.bf16.mxu1 %vm3358_vm1, %v3186_v54  ;;  %2927 = vmatmul.mubr.msk.f32.gmra.mrb[2].mxu0 %vm142_vm0, %v3661_v52  ;;  %v88_v54 = vld [vmem:[%s4775_s0 + $0x260] sm:$0xff] }
  0x4a   :  { %2963 = vmatmul.mubr.msk.f32.gmra.mrb[2].mxu1 %vm142_vm0, %v3661_v52  ;;  %2996 = vmatprep.mubr.msk.f32.mxu0 %vm142_vm0, %v3470_v45  ;;  %v3171_v62 = vpack.c.bf16 %v89_v55, %v88_v54  ;;  %v3325_v54 = vmov 2475754826  }
  0x4b   :  { %3032 = vmatprep.mubr.msk.f32.mxu1 %vm142_vm0, %v3470_v45 }
  0x4e   :  { %3143 = vmatpush3.bf16.xpose.msk.msra.mxu0 %vm3358_vm1, %v3141_v63  ;;  %v3219_v63 = vpack.c.bf16 %v121_v57, %v120_v56  ;;  %v3326_v57 = vmov 2131351028  }
  0x4f   :  { %3191 = vmatpush3.bf16.xpose.msk.msra.mxu1 %vm3358_vm1, %v3189_v0  ;;  %3146 = vmatprep.subr.msk.bf16.mxu0 %vm3358_vm1, %v3144_v1  ;;  %v3174_v0 = vpack.c.bf16 %v107_v59, %v106_v58  ;;  %v3222_v1 = vpack.c.bf16 %v139_v61, %v138_v60  ;;  %v3327_v59 = vmov 2102212464   ;;  %v3328_v61 = vmov 920167782  }
  0x50   :  { %3194 = vmatprep.subr.msk.bf16.mxu1 %vm3358_vm1, %v3192_v2  ;;  %v90_v2 = vld [vmem:[%s4775_s0 + $0x270] sm:$0xff]  ;;  %s3331_s0 = smov [#allocation2]  }
  0x51   :  { %v3177_v7 = vpack.c.bf16 %v91_v3, %v90_v2  ;;  %s2684_s13 = sshll.u32 %s3331_s0, 4  ;;  %s2685_s13 = int_to_ptr.vmem [resolvable:$true] %s2684_s13 }
  0x52   :  { %s3300_s14 = scalar_lea.vmem %s2685_s13, 128  ;;  %p3305_p1 = scmp.lt.s32.totalorder %s2685_s13, %s2685_s13 }
  0x53   :  { %p3301_p0 = scmp.ne.s32.totalorder %s2685_s13, %s3300_s14  ;;  %p3306_p2 = scmp.lt.s32.totalorder %s3300_s14, %s3300_s14 }
  0x55   :  { %p3307_p3 = por %p3306_p2, %p3305_p1 }
  0x56   :  { %3149 = vmatpush3.bf16.xpose.msk.msra.mxu0 %vm3358_vm1, %v3147_v12 }
  0x57   :  { %3197 = vmatpush3.bf16.xpose.msk.msra.mxu1 %vm3358_vm1, %v3195_v13  ;;  %3152 = vmatprep.subr.msk.bf16.mxu0 %vm3358_vm1, %v3150_v14  ;;  %p3308_p4 = pnand %p3307_p3, %p3301_p0 }
  0x58   :  { %3200 = vmatprep.subr.msk.bf16.mxu1 %vm3358_vm1, %v3198_v15 }
  0x5e   :  { %3155 = vmatpush3.bf16.xpose.msk.msra.mxu0 %vm3358_vm1, %v3153_v24 }
  0x5f   :  { %3203 = vmatpush3.bf16.xpose.msk.msra.mxu1 %vm3358_vm1, %v3201_v25  ;;  %3158 = vmatprep.subr.msk.bf16.mxu0 %vm3358_vm1, %v3156_v26 }
  0x60   :  { %3206 = vmatprep.subr.msk.bf16.mxu1 %vm3358_vm1, %v3204_v27 }
  0x66   :  { %3161 = vmatpush3.bf16.xpose.msk.msra.mxu0 %vm3358_vm1, %v3159_v36  ;;  %v3937_v36 = vshrl.u32 %v841_v22, 7 }
  0x67   :  { %3209 = vmatpush3.bf16.xpose.msk.msra.mxu1 %vm3358_vm1, %v3207_v37  ;;  %3164 = vmatprep.subr.msk.bf16.mxu0 %vm3358_vm1, %v3162_v38 }
  0x68   :  { %3212 = vmatprep.subr.msk.bf16.mxu1 %vm3358_vm1, %v3210_v39 }
  0x6e   :  { %3167 = vmatpush3.bf16.xpose.msk.msra.mxu0 %vm3358_vm1, %v3165_v49 }
  0x6f   :  { %3215 = vmatpush3.bf16.xpose.msk.msra.mxu1 %vm3358_vm1, %v3213_v50  ;;  %3170 = vmatprep.subr.msk.bf16.mxu0 %vm3358_vm1, %v3168_v51  ;;  %v3324_v51 = vmov 683565275  }
  0x70   :  { %3218 = vmatprep.subr.msk.bf16.mxu1 %vm3358_vm1, %v3216_v53 }
  0x76   :  { %3173 = vmatpush3.bf16.xpose.msk.msra.mxu0 %vm3358_vm1, %v3171_v62 }
  0x77   :  { %3221 = vmatpush3.bf16.xpose.msk.msra.mxu1 %vm3358_vm1, %v3219_v63  ;;  %3176 = vmatprep.subr.msk.bf16.mxu0 %vm3358_vm1, %v3174_v0 }
  0x78   :  { %3224 = vmatprep.subr.msk.bf16.mxu1 %vm3358_vm1, %v3222_v1 }
  0x7e   :  { %3179 = vmatpush3.bf16.xpose.msk.msra.mxu0 %vm3358_vm1, %v3177_v7 }
  0x7f   :  { %3227 = vmatpush3.bf16.xpose.msk.msra.mxu1 %vm3358_vm1, %v3225_v8 }
  0x85   :  { %2997 = vmatmul.mubr.msk.f32.vlgmr.msra.gmra.mrb[4].mxu0 %vm142_vm0, %v3470_v45 }
  0x86   :  { %3033 = vmatmul.mubr.msk.f32.vlgmr.msra.gmra.mrb[4].mxu1 %vm142_vm0, %v3470_v45  ;;  %2998 = vmatprep.mubr.msk.f32.mxu0 %vm142_vm0, %v3661_v52 }
  0x87   :  { %3034 = vmatprep.mubr.msk.f32.mxu1 %vm142_vm0, %v3661_v52 }
  0x89   :  { %2999 = vmatmul.mubr.msk.f32.gmra.mrb[6].mxu0 %vm142_vm0, %v3661_v52 }
  0x8a   :  { %3035 = vmatmul.mubr.msk.f32.gmra.mrb[6].mxu1 %vm142_vm0, %v3661_v52 }
 0x118   :  { %v3907_v4 = vpop.f32.mrb[0].mxu0 }
 0x119   :  { %v3909_v9 = vpop.f32.mrb[0].mxu1  ;;  %v857_v10 = vand.u32 2147483647, %v3907_v4  ;;  %v860_v45 = vand.u32 2139095040, %v3907_v4  ;;  %v3915_v13 = vpop.f32.mrb[1].mxu0 }
 0x11a   :  { %v1065_v11 = vand.u32 2147483647, %v3909_v9  ;;  %v1068_v12 = vand.u32 2139095040, %v3909_v9  ;;  %v3917_v14 = vpop.f32.mrb[1].mxu1  ;;  %v964_v18 = vand.u32 2139095040, %v3915_v13 }
 0x11b   :  { %v861_v15 = vshrl.u32 %v860_v45, 23  ;;  %v864_v52 = vand.u32 8388607, %v857_v10  ;;  %v961_v21 = vand.u32 2147483647, %v3915_v13  ;;  %v1172_v35 = vand.u32 2139095040, %v3917_v14 }
 0x11c   :  { %v1069_v16 = vshrl.u32 %v1068_v12, 23  ;;  %v1072_v17 = vand.u32 8388607, %v1065_v11  ;;  %v965_v25 = vshrl.u32 %v964_v18, 23  ;;  %v605_v26 = vpop.f32.mrb[2].mxu0 }
 0x11d   :  { %v2828_v19 = vadd.s32 4294967169, %v861_v15  ;;  %v865_v20 = vor.u32 8388608, %v864_v52  ;;  %v3925_v27 = vpop.f32.mrb[2].mxu1  ;;  %v3929_v29 = vand.u32 8388607, %v961_v21  ;;  %v3932_v33 = vpop.f32.mrb[3].mxu0  ;;  %v3944_v40 = vmul.f32 %v605_v26, %v3907_v4 }
 0x11e   :  { %v2836_v23 = vadd.s32 4294967169, %v1069_v16  ;;  %v1073_v24 = vor.u32 8388608, %v1072_v17  ;;  %v2832_v31 = vadd.s32 4294967169, %v965_v25  ;;  %v1169_v32 = vand.u32 2147483647, %v3917_v14  ;;  %v3939_v37 = vpop.f32.mrb[3].mxu1 }
 0x11f   :  { %v867_v28 = vadd.s32 1, %v2828_v19  ;;  %v3934_v34 = vshll.u32 %v865_v20, 8  ;;  %v969_v44 = vor.u32 8388608, %v3929_v29  ;;  %v3959_v56 = vshrl.u32 %v1172_v35, 23 }
 0x120   :  { %v1075_v30 = vadd.s32 1, %v2836_v23  ;;  %v3941_v39 = vshll.u32 %v1073_v24, 8  ;;  %v3951_v48 = vadd.s32 1, %v2832_v31  ;;  %v3955_v49 = vand.u32 8388607, %v1169_v32 }
 0x121   :  { %vm868_vm2 = vcmp.gt.s32.totalorder %v867_v28, 0 }
 0x122   :  { %v869_v38 = vsel %vm868_vm2, %v867_v28, 0  ;;  %vm1076_vm3 = vcmp.gt.s32.totalorder %v1075_v30, 0  ;;  %vm972_vm8 = vcmp.gt.s32.totalorder %v3951_v48, 0 }
 0x123   :  { %v870_v41 = vshrl.u32 %v869_v38, 5  ;;  %v871_v42 = vand.u32 31, %v869_v38  ;;  %v1077_v43 = vsel %vm1076_vm3, %v1075_v30, 0 }
 0x124   :  { %v3947_v46 = vshrl.u32 %v1077_v43, 5  ;;  %v3949_v47 = vand.u32 31, %v1077_v43 }
 0x125   :  { %v872_v50 = vsub.s32 32, %v871_v42  ;;  %v874_v53 = vshll.u32 %v3324_v51, %v871_v42  ;;  %v877_v55 = vshll.u32 %v3325_v54, %v871_v42  ;;  %v880_v58 = vshll.u32 %v3326_v57, %v871_v42 }
 0x126   :  { %v883_v60 = vshll.u32 %v3327_v59, %v871_v42  ;;  %v886_v62 = vshll.u32 %v3328_v61, %v871_v42  ;;  %vm889_vm4 = vcmp.lt.s32.totalorder %v870_v41, 1  ;;  %vm890_vm5 = vcmp.lt.s32.totalorder %v870_v41, 2 }
 0x127   :  { %v875_v63 = vshrl.u32 %v3325_v54, %v872_v50  ;;  %v878_v0 = vshrl.u32 %v3326_v57, %v872_v50  ;;  %v881_v1 = vshrl.u32 %v3327_v59, %v872_v50  ;;  %v873_v2 = vshrl.u32 %v3324_v51, %v872_v50 }
 0x128   :  { %v884_v3 = vshrl.u32 %v3328_v61, %v872_v50  ;;  %v887_v6 = vshrl.u32 %v3329_v5, %v872_v50  ;;  %vm891_vm6 = vcmp.lt.s32.totalorder %v870_v41, 3  ;;  %v1080_v12 = vsub.s32 32, %v3949_v47 }
 0x129   :  { %v876_v7 = vor.u32 %v875_v63, %v874_v53  ;;  %v879_v8 = vor.u32 %v878_v0, %v877_v55  ;;  %v882_v45 = vor.u32 %v881_v1, %v880_v58  ;;  %vm892_vm7 = vcmp.lt.s32.totalorder %v870_v41, 4 }
 0x12a   :  { %v885_v15 = vor.u32 %v884_v3, %v883_v60  ;;  %v888_v52 = vor.u32 %v887_v6, %v886_v62  ;;  %v1082_v16 = vshll.u32 %v3324_v51, %v3949_v47  ;;  %v1085_v25 = vshll.u32 %v3325_v54, %v3949_v47 }
 0x12b   :  { %v893_v17 = vsel %vm889_vm4, %v873_v2, %v876_v7  ;;  %v894_v18 = vsel %vm892_vm7, %v882_v45, 2102212464  ;;  %v897_v19 = vsel %vm889_vm4, %v876_v7, %v879_v8  ;;  %v901_v20 = vsel %vm889_vm4, %v879_v8, %v882_v45 }
 0x12c   :  { %v895_v22 = vsel %vm891_vm6, %v879_v8, %v894_v18  ;;  %v898_v23 = vsel %vm892_vm7, %v885_v15, 920167782  ;;  %v902_v24 = vsel %vm892_vm7, %v888_v52, 1326507024  ;;  %v1081_v30 = vshrl.u32 %v3324_v51, %v1080_v12 }
 0x12d   :  { %v899_v26 = vsel %vm891_vm6, %v882_v45, %v898_v23  ;;  %v903_v28 = vsel %vm891_vm6, %v885_v15, %v902_v24  ;;  %v1083_v31 = vshrl.u32 %v3325_v54, %v1080_v12  ;;  %v896_v35 = vsel %vm890_vm5, %v893_v17, %v895_v22 }
 0x12e   :  { %v900_v38 = vsel %vm890_vm5, %v897_v19, %v899_v26  ;;  %v904_v42 = vsel %vm890_vm5, %v901_v20, %v903_v28  ;;  %v1086_v43 = vshrl.u32 %v3326_v57, %v1080_v12  ;;  %v1088_v63 = vshll.u32 %v3326_v57, %v3949_v47 }
 0x12f   :  { %v3989_v50 = vmul.u32.u64.low %v3934_v34, %v904_v42  ;;  %v3990_v53 = vmul.u32.u64.high %v3934_v34, %v904_v42, %v3989_v50  ;;  %v3993_v55 = vmul.u32.u64.low %v3934_v34, %v900_v38  ;;  %v3994_v58 = vmul.u32.u64.high %v3934_v34, %v900_v38, %v3993_v55 }
 0x130   :  { %v1084_v60 = vor.u32 %v1083_v31, %v1082_v16  ;;  %v1087_v62 = vor.u32 %v1086_v43, %v1085_v25  ;;  %v1089_v0 = vshrl.u32 %v3327_v59, %v1080_v12  ;;  %v912_v41 = vmul.u32 %v3934_v34, %v896_v35 }
 0x131   :  { %v1091_v1 = vshll.u32 %v3327_v59, %v3949_v47  ;;  %v1092_v2 = vshrl.u32 %v3328_v61, %v1080_v12  ;;  %v1095_v3 = vshrl.u32 %v3329_v5, %v1080_v12  ;;  %v1094_v7 = vshll.u32 %v3328_v61, %v3949_v47 }
 0x132   :  { %v1090_v6 = vor.u32 %v1089_v0, %v1088_v63  ;;  %vm1097_vm9 = vcmp.lt.s32.totalorder %v3947_v46, 1  ;;  %vm1098_vm10 = vcmp.lt.s32.totalorder %v3947_v46, 2  ;;  %vm914_vm11 = vc.u32 %v3990_v53, %v3993_v55 }
 0x133   :  { %v915_v8 = vadd.s32 1, %v3994_v58  ;;  %v1093_v34 = vor.u32 %v1092_v2, %v1091_v1  ;;  %vm1099_vm12 = vcmp.lt.s32.totalorder %v3947_v46, 3  ;;  %v1096_v45 = vor.u32 %v1095_v3, %v1094_v7 }
 0x134   :  { %vm1100_vm13 = vcmp.lt.s32.totalorder %v3947_v46, 4  ;;  %v1101_v15 = vsel %vm1097_vm9, %v1081_v30, %v1084_v60  ;;  %v1105_v12 = vsel %vm1097_vm9, %v1084_v60, %v1087_v62  ;;  %v1109_v17 = vsel %vm1097_vm9, %v1087_v62, %v1090_v6 }
 0x135   :  { %v916_v52 = vsel %vm914_vm11, %v915_v8, %v3994_v58  ;;  %v1102_v16 = vsel %vm1100_vm13, %v1090_v6, 2102212464  ;;  %v1106_v47 = vsel %vm1100_vm13, %v1093_v34, 920167782  ;;  %v1110_v22 = vsel %vm1100_vm13, %v1096_v45, 1326507024 }
 0x136   :  { %v917_v18 = vadd.s32 %v916_v52, %v912_v41  ;;  %v1103_v19 = vsel %vm1099_vm12, %v1087_v62, %v1102_v16  ;;  %v1107_v20 = vsel %vm1099_vm12, %v1090_v6, %v1106_v47  ;;  %v1111_v25 = vsel %vm1099_vm12, %v1093_v34, %v1110_v22 }
 0x137   :  { %v1104_v23 = vsel %vm1098_vm10, %v1101_v15, %v1103_v19  ;;  %v1108_v24 = vsel %vm1098_vm10, %v1105_v12, %v1107_v20  ;;  %v973_v26 = vsel %vm972_vm8, %v3951_v48, 0  ;;  %v1112_v30 = vsel %vm1098_vm10, %v1109_v17, %v1111_v25 }
 0x138   :  { %v918_v28 = vadd.s32 536870912, %v917_v18  ;;  %v4023_v31 = vmul.u32.u64.low %v3941_v39, %v1108_v24  ;;  %v4024_v35 = vmul.u32.u64.high %v3941_v39, %v1108_v24, %v4023_v31  ;;  %v974_v43 = vshrl.u32 %v973_v26, 5 }
 0x139   :  { %v4028_v38 = vmul.u32.u64.low %v3941_v39, %v1112_v30  ;;  %v4029_v42 = vmul.u32.u64.high %v3941_v39, %v1112_v30, %v4028_v38  ;;  %v4033_v50 = vshll.u32 %v969_v44, 8  ;;  %v4036_v48 = vadd.s32 %v3993_v55, %v3990_v53 }
 0x13a   :  { %v4038_v58 = vshrl.u32 %v918_v28, 30  ;;  %v1120_v46 = vmul.u32 %v3941_v39, %v1104_v23  ;;  %v975_v60 = vand.u32 31, %v973_v26  ;;  %vm993_vm14 = vcmp.lt.s32.totalorder %v974_v43, 1 }
 0x13b   :  { %vm995_vm15 = vcmp.lt.s32.totalorder %v974_v43, 3  ;;  %v2840_v62 = vadd.s32 4294967169, %v3959_v56  ;;  %v1177_v63 = vor.u32 8388608, %v3955_v49  ;;  %v1123_v29 = vadd.s32 1, %v4024_v35 }
 0x13c   :  { %v920_v0 = vshll.u32 %v4038_v58, 30  ;;  %v976_v44 = vsub.s32 32, %v975_v60  ;;  %vm996_vm0 = vcmp.lt.s32.totalorder %v974_v43, 4  ;;  %vm1122_vm1 = vc.u32 %v4029_v42, %v4023_v31 }
 0x13d   :  { %v978_v53 = vshll.u32 %v3324_v51, %v975_v60  ;;  %v981_v39 = vshll.u32 %v3325_v54, %v975_v60  ;;  %v984_v55 = vshll.u32 %v3326_v57, %v975_v60  ;;  %v1124_v56 = vsel %vm1122_vm1, %v1123_v29, %v4024_v35 }
 0x13e   :  { %v4050_v41 = vsub.s32 %v917_v18, %v920_v0  ;;  %v977_v49 = vshrl.u32 %v3324_v51, %v976_v44  ;;  %v979_v1 = vshrl.u32 %v3325_v54, %v976_v44  ;;  %v1125_v2 = vadd.s32 %v1124_v56, %v1120_v46 }
 0x13f   :  { %v982_v3 = vshrl.u32 %v3326_v57, %v976_v44  ;;  %v985_v6 = vshrl.u32 %v3327_v59, %v976_v44  ;;  %v987_v7 = vshll.u32 %v3327_v59, %v975_v60  ;;  %v988_v45 = vshrl.u32 %v3328_v61, %v976_v44 }
 0x140   :  { %v923_v8 = vsub.s32 0, %v4050_v41  ;;  %v980_v34 = vor.u32 %v979_v1, %v978_v53  ;;  %v990_v15 = vshll.u32 %v3328_v61, %v975_v60  ;;  %v1126_v12 = vadd.s32 536870912, %v1125_v2 }
 0x141   :  { %v983_v52 = vor.u32 %v982_v3, %v981_v39  ;;  %v986_v16 = vor.u32 %v985_v6, %v984_v55  ;;  %v991_v47 = vshrl.u32 %v3329_v5, %v976_v44  ;;  %v989_v18 = vor.u32 %v988_v45, %v987_v7 }
 0x142   :  { %v2829_v17 = vmin.u32 %v923_v8, %v4050_v41  ;;  %v997_v19 = vsel %vm993_vm14, %v977_v49, %v980_v34  ;;  %v1179_v20 = vadd.s32 1, %v2840_v62  ;;  %v4064_v22 = vshrl.u32 %v1126_v12, 30 }
 0x143   :  { %v992_v23 = vor.u32 %v991_v47, %v990_v15  ;;  %v998_v24 = vsel %vm996_vm0, %v986_v16, 2102212464  ;;  %v1001_v25 = vsel %vm993_vm14, %v980_v34, %v983_v52  ;;  %v1002_v30 = vsel %vm996_vm0, %v989_v18, 920167782 }
 0x144   :  { %v925_v26 = vclz %v2829_v17  ;;  %v999_v28 = vsel %vm995_vm15, %v983_v52, %v998_v24  ;;  %v1005_v35 = vsel %vm993_vm14, %v983_v52, %v986_v16  ;;  %v1128_v38 = vshll.u32 %v4064_v22, 30 }
 0x145   :  { %vm994_vm2 = vcmp.lt.s32.totalorder %v974_v43, 2  ;;  %v1003_v46 = vsel %vm995_vm15, %v986_v16, %v1002_v30  ;;  %v1006_v60 = vsel %vm996_vm0, %v992_v23, 1326507024  ;;  %vm1180_vm4 = vcmp.gt.s32.totalorder %v1179_v20, 0 }
 0x146   :  { %v2830_v62 = vadd.s32 4294967294, %v925_v26  ;;  %v1000_v0 = vsel %vm994_vm2, %v997_v19, %v999_v28  ;;  %v1004_v29 = vsel %vm994_vm2, %v1001_v25, %v1003_v46  ;;  %v1007_v44 = vsel %vm995_vm15, %v989_v18, %v1006_v60 }
 0x147   :  { %v4075_v53 = vsub.s32 %v1125_v2, %v1128_v38  ;;  %v1008_v39 = vsel %vm994_vm2, %v1005_v35, %v1007_v44  ;;  %v4078_v55 = vmul.u32.u64.low %v4033_v50, %v1004_v29  ;;  %v4079_v56 = vmul.u32.u64.high %v4033_v50, %v1004_v29, %v4078_v55 }
 0x148   :  { %vm2831_vm3 = vcmp.lt.s32.totalorder %v2830_v62, 0  ;;  %v4083_v49 = vmul.u32.u64.low %v4033_v50, %v1008_v39  ;;  %v4084_v1 = vmul.u32.u64.high %v4033_v50, %v1008_v39, %v4083_v49  ;;  %v1121_v6 = vadd.s32 %v4023_v31, %v4029_v42 }
 0x149   :  { %v928_v3 = vsel %vm2831_vm3, 0, %v2830_v62  ;;  %v1131_v43 = vsub.s32 0, %v4075_v53  ;;  %v1181_v2 = vsel %vm1180_vm4, %v1179_v20, 0  ;;  %v1016_v34 = vmul.u32 %v4033_v50, %v1000_v0 }
 0x14a   :  { %v929_v7 = vsub.s32 32, %v928_v3  ;;  %v933_v8 = vsub.s32 4294967266, %v928_v3  ;;  %v4090_v45 = vshll.u32 %v1177_v63, 8  ;;  %v930_v15 = vshll.u32 %v4050_v41, %v928_v3 }
 0x14b   :  { %v2837_v12 = vmin.u32 %v1131_v43, %v4075_v53  ;;  %v1019_v52 = vadd.s32 1, %v4079_v56  ;;  %v1183_v16 = vand.u32 31, %v1181_v2  ;;  %vm1018_vm5 = vc.u32 %v4084_v1, %v4078_v55 }
 0x14c   :  { %v931_v47 = vshrl.u32 %v4036_v48, %v929_v7  ;;  %v934_v17 = vadd.s32 127, %v933_v8  ;;  %v4098_v31 = vshrl.u32 %v1181_v2, 5  ;;  %v943_v18 = vsub.s32 4, %v4038_v58 }
 0x14d   :  { %v1133_v42 = vclz %v2837_v12  ;;  %v1020_v50 = vsel %vm1018_vm5, %v1019_v52, %v4079_v56  ;;  %v1184_v63 = vsub.s32 32, %v1183_v16  ;;  %v1186_v23 = vshll.u32 %v3324_v51, %v1183_v16 }
 0x14e   :  { %v932_v41 = vor.u32 %v931_v47, %v930_v15  ;;  %v935_v19 = vshll.u32 %v934_v17, 23  ;;  %v1021_v20 = vadd.s32 %v1020_v50, %v1016_v34  ;;  %vm859_vm6 = vcmp.lt.s32.totalorder %v3907_v4, 0 }
 0x14f   :  { %v2838_v48 = vadd.s32 4294967294, %v1133_v42  ;;  %v1187_v24 = vshrl.u32 %v3325_v54, %v1184_v63  ;;  %v1189_v25 = vshll.u32 %v3325_v54, %v1183_v16  ;;  %v1190_v26 = vshrl.u32 %v3326_v57, %v1184_v63 }
 0x150   :  { %vm4109_vm7 = vcmp.le.f32.partialorder %v857_v10, 0.7853982  ;;  %v936_v30 = vor.u32 4788187, %v935_v19  ;;  %v939_v35 = vcvt.s32.f32 %v932_v41  ;;  %v1022_v38 = vadd.s32 536870912, %v1021_v20 }
 0x151   :  { %v1185_v46 = vshrl.u32 %v3324_v51, %v1184_v63  ;;  %vm2839_vm8 = vcmp.lt.s32.totalorder %v2838_v48, 0  ;;  %v1188_v60 = vor.u32 %v1187_v24, %v1186_v23  ;;  %v1192_v62 = vshll.u32 %v3326_v57, %v1183_v16 }
 0x152   :  { %v1193_v0 = vshrl.u32 %v3327_v59, %v1184_v63  ;;  %v937_v29 = vand.u32 2147483647, %v936_v30  ;;  %v1136_v44 = vsel %vm2839_vm8, 0, %v2838_v48  ;;  %v4116_v39 = vshrl.u32 %v1022_v38, 30 }
 0x153   :  { %v1191_v56 = vor.u32 %v1190_v26, %v1189_v25  ;;  %v1137_v10 = vsub.s32 32, %v1136_v44  ;;  %v1138_v49 = vshll.u32 %v4075_v53, %v1136_v44  ;;  %v1141_v3 = vsub.s32 4294967266, %v1136_v44 }
 0x154   :  { %v1195_v43 = vshll.u32 %v3327_v59, %v1183_v16  ;;  %v940_v2 = vmul.f32 %v939_v35, %v937_v29  ;;  %v1024_v7 = vshll.u32 %v4116_v39, 30  ;;  %v1194_v8 = vor.u32 %v1193_v0, %v1192_v62 }
 0x155   :  { %v1196_v34 = vshrl.u32 %v3328_v61, %v1184_v63  ;;  %v1139_v15 = vshrl.u32 %v1121_v6, %v1137_v10  ;;  %v1142_v12 = vadd.s32 127, %v1141_v3  ;;  %v1198_v52 = vshll.u32 %v3328_v61, %v1183_v16 }
 0x156   :  { %v1199_v47 = vshrl.u32 %v3329_v5, %v1184_v63  ;;  %v941_v17 = vxor.u32 2147483648, %v940_v2  ;;  %v4124_v42 = vsub.s32 %v1021_v20, %v1024_v7  ;;  %vm1201_vm9 = vcmp.lt.s32.totalorder %v4098_v31, 1 }
 0x157   :  { %v1197_v50 = vor.u32 %v1196_v34, %v1195_v43  ;;  %v1140_v53 = vor.u32 %v1139_v15, %v1138_v49  ;;  %v1143_v41 = vshll.u32 %v1142_v12, 23  ;;  %vm1202_vm10 = vcmp.lt.s32.totalorder %v4098_v31, 2 }
 0x158   :  { %v1200_v19 = vor.u32 %v1199_v47, %v1198_v52  ;;  %v942_v23 = vsel %vm859_vm6, %v941_v17, %v940_v2  ;;  %vm1067_vm11 = vcmp.lt.s32.totalorder %v3909_v9, 0  ;;  %v1027_v6 = vsub.s32 0, %v4124_v42  ;;  %v4134_v16 = vpop.f32.mrb[4].mxu0 }
 0x159   :  { %vm1203_vm12 = vcmp.lt.s32.totalorder %v4098_v31, 3  ;;  %vm1204_vm13 = vcmp.lt.s32.totalorder %v4098_v31, 4  ;;  %v4136_v63 = vpop.f32.mrb[4].mxu1  ;;  %v945_v20 = vsel %vm4109_vm7, %v3907_v4, %v942_v23  ;;  %v1144_v48 = vor.u32 4788187, %v1143_v41  ;;  %v4145_v26 = vpop.f32.mrb[5].mxu0 }
 0x15a   :  { %v1205_v24 = vsel %vm1201_vm9, %v1185_v46, %v1188_v60  ;;  %v1206_v25 = vsel %vm1204_vm13, %v1194_v8, 2102212464  ;;  %v4147_v30 = vpop.f32.mrb[5].mxu1  ;;  %3268 = vcosq.f32 %v945_v20  ;;  %v2833_v35 = vmin.u32 %v1027_v6, %v4124_v42 }
 0x15b   :  { %v1207_v38 = vsel %vm1203_vm12, %v1191_v56, %v1206_v25  ;;  %v1209_v62 = vsel %vm1201_vm9, %v1188_v60, %v1191_v56  ;;  %vm843_vm14 = vcmp.eq.s32.totalorder %v3937_v36, 0  ;;  %vm844_vm15 = vcmp.eq.s32.totalorder %v3937_v36, 5 }
 0x15c   :  { %3270 = vsinq.f32 %v945_v20  ;;  %v1145_v46 = vand.u32 2147483647, %v1144_v48  ;;  %v1147_v0 = vcvt.s32.f32 %v1140_v53  ;;  %v1210_v29 = vsel %vm1204_vm13, %v1197_v50, 920167782  ;;  %v4164_v3 = vpop.f32.mrb[6].mxu0  ;;  %vm4220_vm8 = vmor %vm843_vm14, %vm844_vm15 }
 0x15d   :  { %v1029_v44 = vclz %v2833_v35  ;;  %v1211_v10 = vsel %vm1203_vm12, %v1194_v8, %v1210_v29  ;;  %v1213_v49 = vsel %vm1201_vm9, %v1191_v56, %v1194_v8  ;;  %v1214_v60 = vsel %vm1204_vm13, %v1200_v19, 1326507024  ;;  %v4199_v19 = vpop.f32.mrb[6].mxu1 }
 0x15e   :  { %v1148_v43 = vmul.f32 %v1147_v0, %v1145_v46  ;;  %v1208_v2 = vsel %vm1202_vm10, %v1205_v24, %v1207_v38  ;;  %v1212_v7 = vsel %vm1202_vm10, %v1209_v62, %v1211_v10  ;;  %v1215_v34 = vsel %vm1203_vm12, %v1197_v50, %v1214_v60 }
 0x15f   :  { %vm846_vm0 = vcmp.eq.s32.totalorder %v3937_v36, 6  ;;  %v2834_v15 = vadd.s32 4294967294, %v1029_v44  ;;  %v1216_v56 = vsel %vm1202_vm10, %v1213_v49, %v1215_v34  ;;  %v944_v50 = vsel %vm859_vm6, %v943_v18, %v4038_v58  ;;  %v4224_v49 = vpop.f32.mrb[7].mxu0 }
 0x160   :  { %v4176_v8 = vmul.u32.u64.low %v4090_v45, %v1212_v7  ;;  %v4177_v12 = vmul.u32.u64.high %v4090_v45, %v1212_v7, %v4176_v8  ;;  %v1149_v52 = vxor.u32 2147483648, %v1148_v43  ;;  %vm4191_vm1 = vcmp.le.f32.partialorder %v1065_v11, 0.7853982  ;;  %vm4230_vm14 = vmor %vm4220_vm8, %vm846_vm0 }
 0x161   :  { %v4181_v47 = vmul.u32.u64.low %v4090_v45, %v1216_v56  ;;  %v4182_v17 = vmul.u32.u64.high %v4090_v45, %v1216_v56, %v4181_v47  ;;  %v1017_v53 = vadd.s32 %v4078_v55, %v4084_v1  ;;  %vm2835_vm2 = vcmp.lt.s32.totalorder %v2834_v15, 0 }
 0x162   :  { %v946_v41 = vsel %vm4109_vm7, 0, %v944_v50  ;;  %v1150_v23 = vsel %vm1067_vm11, %v1149_v52, %v1148_v43  ;;  %v1032_v6 = vsel %vm2835_vm2, 0, %v2834_v15  ;;  %vm856_vm3 = vcmp.eq.s32.totalorder %v3937_v36, 1 }
 0x163   :  { %v950_v58 = vadd.s32 3, %v946_v41  ;;  %v1799_v11 = vand.u32 3, %v946_v41  ;;  %v1153_v18 = vsel %vm4191_vm1, %v3909_v9, %v1150_v23  ;;  %v1033_v20 = vsub.s32 32, %v1032_v6 }
 0x164   :  { %v1037_v55 = vsub.s32 4294967266, %v1032_v6  ;;  %v1224_v1 = vmul.u32 %v4090_v45, %v1208_v2  ;;  %vm949_vm4 = vweird.f32 %v3907_v4  ;;  %3272 = vcosq.f32 %v1153_v18  ;;  %v3269_v24 = vpop.eup %3268 }
 0x165   :  { %v1034_v28 = vshll.u32 %v4124_v42, %v1032_v6  ;;  %vm1226_vm5 = vc.u32 %v4182_v17, %v4176_v8  ;;  %v1227_v48 = vadd.s32 1, %v4177_v12  ;;  %vm1705_vm6 = vcmp.eq.s32.totalorder %v3937_v36, 2 }
 0x166   :  { %3274 = vsinq.f32 %v1153_v18  ;;  %v1035_v25 = vshrl.u32 %v1017_v53, %v1033_v20  ;;  %v1038_v35 = vadd.s32 127, %v1037_v55  ;;  %v951_v38 = vand.u32 3, %v950_v58  ;;  %v3271_v45 = vpop.eup %3270 }
 0x167   :  { %v1228_v62 = vsel %vm1226_vm5, %v1227_v48, %v4177_v12  ;;  %v957_v46 = vxor.u32 2147483648, %v3269_v24  ;;  %vm1800_vm9 = vcmp.lt.s32.totalorder %v1799_v11, 2  ;;  %vm1801_vm10 = vcmp.eq.s32.totalorder %v1799_v11, 0 }
 0x168   :  { %v1036_v0 = vor.u32 %v1035_v25, %v1034_v28  ;;  %v1039_v29 = vshll.u32 %v1038_v35, 23  ;;  %v1229_v44 = vadd.s32 %v1228_v62, %v1224_v1  ;;  %vm952_vm12 = vcmp.lt.s32.totalorder %v951_v38, 2 }
 0x169   :  { %vm953_vm13 = vcmp.eq.s32.totalorder %v951_v38, 0  ;;  %v954_v10 = vxor.u32 2147483648, %v3271_v45  ;;  %vm956_vm2 = vcmp.eq.s32.totalorder %v951_v38, 2  ;;  %vm1804_vm7 = vcmp.eq.s32.totalorder %v1799_v11, 2 }
 0x16a   :  { %v1040_v60 = vor.u32 4788187, %v1039_v29  ;;  %v1043_v43 = vcvt.s32.f32 %v1036_v0  ;;  %v1230_v2 = vadd.s32 536870912, %v1229_v44  ;;  %v958_v34 = vsel %vm956_vm2, %v957_v46, %v3271_v45 }
 0x16b   :  { %v955_v15 = vsel %vm953_vm13, %v3269_v24, %v954_v10  ;;  %v1803_v56 = vsel %vm1801_vm10, %v3269_v24, %v954_v10  ;;  %v1806_v12 = vsel %vm1804_vm7, %v957_v46, %v3271_v45  ;;  %v1151_v52 = vsub.s32 4, %v4064_v22 }
 0x16c   :  { %v1041_v47 = vand.u32 2147483647, %v1040_v60  ;;  %v4236_v50 = vshrl.u32 %v1230_v2, 30  ;;  %v959_v53 = vsel %vm952_vm12, %v955_v15, %v958_v34  ;;  %v1807_v41 = vsel %vm1800_vm9, %v1803_v56, %v1806_v12 }
 0x16d   :  { %v848_v23 = vsel %vm4230_vm14, %v3907_v4, 0.0  ;;  %v960_v6 = vsel %vm949_vm4, nan, %v959_v53  ;;  %v1808_v58 = vsel %vm949_vm4, nan, %v1807_v41  ;;  %v1152_v18 = vsel %vm1067_vm11, %v1151_v52, %v4064_v22 }
 0x16e   :  { %vm963_vm15 = vcmp.lt.s32.totalorder %v3915_v13, 0  ;;  %v1044_v20 = vmul.f32 %v1043_v43, %v1041_v47  ;;  %v1232_v11 = vshll.u32 %v4236_v50, 30  ;;  %v1689_v55 = vsel %vm856_vm3, %v960_v6, 0.0  ;;  %v3273_v1 = vpop.eup %3272  ;;  %v4278_v43 = vpop.f32.mrb[7].mxu1 }
 0x16f   :  { %vm4256_vm0 = vcmp.le.f32.partialorder %v961_v21, 0.7853982  ;;  %v1697_v4 = vadd.f32 %v1689_v55, %v848_v23  ;;  %v1154_v48 = vsel %vm4191_vm1, 0, %v1152_v18  ;;  %v2549_v22 = vmul.f32 %v3925_v27, %v3909_v9 }
 0x170   :  { %v3275_v24 = vpop.eup %3274  ;;  %v1045_v25 = vxor.u32 2147483648, %v1044_v20  ;;  %v1233_v35 = vsub.s32 %v1229_v44, %v1232_v11  ;;  %v2530_v38 = vsel %vm1705_vm6, %v1808_v58, 0.0  ;;  %v1158_v45 = vadd.s32 3, %v1154_v48 }
 0x171   :  { %v2538_v62 = vadd.f32 %v2530_v38, %v1697_v4  ;;  %vm4790_vm11 = vcmp.eq.s32.totalorder %v3937_v36, 3  ;;  %v1162_v42 = vxor.u32 2147483648, %v3275_v24  ;;  %v2005_v46 = vand.u32 3, %v1154_v48 }
 0x172   :  { %v2555_v21 = vsel %vm4790_vm11, %v3944_v40, 0.0  ;;  %v1046_v31 = vsel %vm963_vm15, %v1045_v25, %v1044_v20  ;;  %v1235_v0 = vsub.s32 0, %v1233_v35  ;;  %v1159_v29 = vand.u32 3, %v1158_v45  ;;  %vm4791_vm13 = vmmov %vm4790_vm11 }
 0x173   :  { %v1165_v27 = vxor.u32 2147483648, %v3273_v1  ;;  %v1049_v44 = vsel %vm4256_vm0, %v3915_v13, %v1046_v31  ;;  %v4274_v10 = vadd.f32 %v2555_v21, %v2538_v62  ;;  %vm1157_vm1 = vweird.f32 %v3909_v9 }
 0x174   :  { %v1047_v60 = vsub.s32 4, %v4116_v39  ;;  %3276 = vcosq.f32 %v1049_v44  ;;  %v2841_v40 = vmin.u32 %v1235_v0, %v1233_v35  ;;  %vm1161_vm4 = vcmp.eq.s32.totalorder %v1159_v29, 0 }
 0x175   :  { %vm2007_vm5 = vcmp.eq.s32.totalorder %v2005_v46, 0  ;;  %3278 = vsinq.f32 %v1049_v44  ;;  %vm1160_vm7 = vcmp.lt.s32.totalorder %v1159_v29, 2  ;;  %v1163_v2 = vsel %vm1161_vm4, %v3273_v1, %v1162_v42 }
 0x176   :  { %vm1164_vm8 = vcmp.eq.s32.totalorder %v1159_v29, 2  ;;  %v1237_v34 = vclz %v2841_v40  ;;  %v2009_v56 = vsel %vm2007_vm5, %v3273_v1, %v1162_v42  ;;  %vm2010_vm9 = vcmp.eq.s32.totalorder %v2005_v46, 2 }
 0x177   :  { %v1166_v15 = vsel %vm1164_vm8, %v1165_v27, %v3275_v24  ;;  %vm2006_vm10 = vcmp.lt.s32.totalorder %v2005_v46, 2  ;;  %v2012_v52 = vsel %vm2010_vm9, %v1165_v27, %v3275_v24  ;;  %v1048_v47 = vsel %vm963_vm15, %v1047_v60, %v4116_v39  ;;  %vm4792_vm9 = vmmov %vm4791_vm13 }
 0x178   :  { %v1167_v12 = vsel %vm1160_vm7, %v1163_v2, %v1166_v15  ;;  %v2842_v53 = vadd.s32 4294967294, %v1237_v34  ;;  %v2013_v23 = vsel %vm2006_vm10, %v2009_v56, %v2012_v52  ;;  %v1050_v6 = vsel %vm4256_vm0, 0, %v1048_v47 }
 0x179   :  { %v1168_v41 = vsel %vm1157_vm1, nan, %v1167_v12  ;;  %v850_v58 = vsel %vm4230_vm14, %v3909_v9, 0.0  ;;  %v2014_v20 = vsel %vm1157_vm1, nan, %v2013_v23  ;;  %v1054_v11 = vadd.s32 3, %v1050_v6 }
 0x17a   :  { %v1691_v18 = vsel %vm856_vm3, %v1168_v41, 0.0  ;;  %vm2843_vm12 = vcmp.lt.s32.totalorder %v2842_v53, 0  ;;  %v1225_v55 = vadd.s32 %v4176_v8, %v4182_v17  ;;  %v2532_v28 = vsel %vm1705_vm6, %v2014_v20, 0.0 }
 0x17b   :  { %v1699_v39 = vadd.f32 %v1691_v18, %v850_v58  ;;  %v1240_v1 = vsel %vm2843_vm12, 0, %v2842_v53  ;;  %v2548_v4 = vmul.f32 %v3932_v33, %v3915_v13  ;;  %v1902_v38 = vand.u32 3, %v1050_v6 }
 0x17c   :  { %v1241_v48 = vsub.s32 32, %v1240_v1  ;;  %v1245_v24 = vsub.s32 4294967266, %v1240_v1  ;;  %v2557_v9 = vsel %vm4791_vm13, %v2549_v22, 0.0  ;;  %v1055_v45 = vand.u32 3, %v1054_v11 }
 0x17d   :  { %v2540_v25 = vadd.f32 %v2532_v28, %v1699_v39  ;;  %v1242_v21 = vshll.u32 %v1233_v35, %v1240_v1  ;;  %vm1171_vm2 = vcmp.lt.s32.totalorder %v3917_v14, 0  ;;  %v2571_v31 = vrot.slane %v4274_v10, 4 }
 0x17e   :  { %v3277_v62 = vpop.eup %3276  ;;  %v1243_v42 = vshrl.u32 %v1225_v55, %v1241_v48  ;;  %v1246_v46 = vadd.s32 127, %v1245_v24  ;;  %vm1053_vm15 = vweird.f32 %v3915_v13  ;;  %vm1903_vm0 = vcmp.lt.s32.totalorder %v1902_v38, 2 }
 0x17f   :  { %v2565_v8 = vadd.f32 %v2557_v9, %v2540_v25  ;;  %v3279_v17 = vpop.eup %3278  ;;  %vm1057_vm11 = vcmp.eq.s32.totalorder %v1055_v45, 0  ;;  %v1061_v27 = vxor.u32 2147483648, %v3277_v62  ;;  %vm1904_vm1 = vcmp.eq.s32.totalorder %v1902_v38, 0 }
 0x180   :  { %v1244_v33 = vor.u32 %v1243_v42, %v1242_v21  ;;  %v1247_v0 = vshll.u32 %v1246_v46, 23  ;;  %v1058_v29 = vxor.u32 2147483648, %v3279_v17  ;;  %vm1907_vm4 = vcmp.eq.s32.totalorder %v1902_v38, 2 }
 0x181   :  { %vm1060_vm5 = vcmp.eq.s32.totalorder %v1055_v45, 2  ;;  %v1255_v44 = vsub.s32 4, %v4236_v50  ;;  %vm1056_vm7 = vcmp.lt.s32.totalorder %v1055_v45, 2  ;;  %v1909_v2 = vsel %vm1907_vm4, %v1061_v27, %v3279_v17 }
 0x182   :  { %v1248_v22 = vor.u32 4788187, %v1247_v0  ;;  %v1059_v35 = vsel %vm1057_vm11, %v3277_v62, %v1058_v29  ;;  %v1062_v60 = vsel %vm1060_vm5, %v1061_v27, %v3279_v17  ;;  %v1906_v40 = vsel %vm1904_vm1, %v3277_v62, %v1058_v29 }
 0x183   :  { %v1251_v15 = vcvt.s32.f32 %v1244_v33  ;;  %v1063_v56 = vsel %vm1056_vm7, %v1059_v35, %v1062_v60  ;;  %v1910_v12 = vsel %vm1903_vm0, %v1906_v40, %v1909_v2  ;;  %v2572_v52 = vadd.f32 %v2571_v31, %v4274_v10  ;;  %vm4793_vm0 = vmmov %vm4792_vm9 }
 0x184   :  { %v1249_v34 = vand.u32 2147483647, %v1248_v22  ;;  %v2583_v47 = vrot.slane %v2565_v8, 4  ;;  %v1064_v53 = vsel %vm1053_vm15, nan, %v1063_v56  ;;  %v1911_v41 = vsel %vm1053_vm15, nan, %v1910_v12 }
 0x185   :  { %v849_v6 = vsel %vm4230_vm14, %v3915_v13, 0.0  ;;  %v1690_v58 = vsel %vm856_vm3, %v1064_v53, 0.0  ;;  %v1256_v18 = vsel %vm1171_vm2, %v1255_v44, %v4236_v50  ;;  %v2550_v20 = vmul.f32 %v3939_v37, %v3917_v14 }
 0x186   :  { %v1252_v23 = vmul.f32 %v1251_v15, %v1249_v34  ;;  %v1698_v10 = vadd.f32 %v1690_v58, %v849_v6  ;;  %vm1170_vm8 = vcmp.le.f32.partialorder %v1169_v32, 0.7853982  ;;  %v2531_v11 = vsel %vm1705_vm6, %v1911_v41, 0.0 }
 0x187   :  { %v2573_v55 = vrot.slane %v2572_v52, 2  ;;  %v2584_v13 = vadd.f32 %v2583_v47, %v2565_v8  ;;  %v1258_v28 = vsel %vm1170_vm8, 0, %v1256_v18  ;;  %v2556_v50 = vsel %vm4792_vm9, %v2548_v4, 0.0 }
 0x188   :  { %v1253_v39 = vxor.u32 2147483648, %v1252_v23  ;;  %v2539_v1 = vadd.f32 %v2531_v11, %v1698_v10  ;;  %v1273_v24 = vand.u32 2147483647, %v4134_v16  ;;  %v1262_v32 = vadd.s32 3, %v1258_v28 }
 0x189   :  { %v1276_v38 = vand.u32 2139095040, %v4134_v16  ;;  %v4335_v9 = vadd.f32 %v2573_v55, %v2572_v52  ;;  %v2585_v45 = vrot.slane %v2584_v13, 2  ;;  %v2108_v62 = vand.u32 3, %v1258_v28 }
 0x18a   :  { %v1254_v48 = vsel %vm1171_vm2, %v1253_v39, %v1252_v23  ;;  %v4332_v25 = vadd.f32 %v2556_v50, %v2539_v1  ;;  %v1280_v42 = vand.u32 8388607, %v1273_v24  ;;  %v1481_v4 = vand.u32 2147483647, %v4136_v63 }
 0x18b   :  { %v1257_v37 = vsel %vm1170_vm8, %v3917_v14, %v1254_v48  ;;  %v1277_v21 = vshrl.u32 %v1276_v38, 23  ;;  %v1484_v46 = vand.u32 2139095040, %v4136_v63  ;;  %v1263_v8 = vand.u32 3, %v1262_v32 }
 0x18c   :  { %3280 = vcosq.f32 %v1257_v37  ;;  %v2575_v33 = vrot.slane %v4335_v9, 1  ;;  %v4342_v0 = vadd.f32 %v2585_v45, %v2584_v13  ;;  %v851_v29 = vsel %vm4230_vm14, %v3917_v14, 0.0 }
 0x18d   :  { %3282 = vsinq.f32 %v1257_v37  ;;  %v2844_v17 = vadd.s32 4294967169, %v1277_v21  ;;  %v1485_v31 = vshrl.u32 %v1484_v46, 23  ;;  %v1380_v27 = vand.u32 2139095040, %v4145_v26 }
 0x18e   :  { %vm2109_vm10 = vcmp.lt.s32.totalorder %v2108_v62, 2  ;;  %v1281_v22 = vor.u32 8388608, %v1280_v42  ;;  %v4350_v60 = vand.u32 8388607, %v1481_v4  ;;  %vm1261_vm12 = vweird.f32 %v3917_v14 }
 0x18f   :  { %v1283_v35 = vadd.s32 1, %v2844_v17  ;;  %v2852_v44 = vadd.s32 4294967169, %v1485_v31  ;;  %vm2110_vm13 = vcmp.eq.s32.totalorder %v2108_v62, 0  ;;  %vm2113_vm2 = vcmp.eq.s32.totalorder %v2108_v62, 2 }
 0x190   :  { %v1377_v40 = vand.u32 2147483647, %v4145_v26  ;;  %v1381_v2 = vshrl.u32 %v1380_v27, 23  ;;  %vm1264_vm15 = vcmp.lt.s32.totalorder %v1263_v8, 2  ;;  %v2558_v34 = vsel %vm4793_vm0, %v2550_v20, 0.0 }
 0x191   :  { %vm1284_vm11 = vcmp.gt.s32.totalorder %v1283_v35, 0  ;;  %v1491_v15 = vadd.s32 1, %v2852_v44  ;;  %v2577_v56 = vrot.slane %v4332_v25, 4  ;;  %vm1265_vm1 = vcmp.eq.s32.totalorder %v1263_v8, 0 }
 0x192   :  { %vm1268_vm4 = vcmp.eq.s32.totalorder %v1263_v8, 2  ;;  %v1285_v12 = vsel %vm1284_vm11, %v1283_v35, 0  ;;  %v4357_v53 = vshll.u32 %v1281_v22, 8  ;;  %v1489_v41 = vor.u32 8388608, %v4350_v60 }
 0x193   :  { %v1287_v47 = vand.u32 31, %v1285_v12  ;;  %vm1492_vm5 = vcmp.gt.s32.totalorder %v1491_v15, 0  ;;  %v1286_v58 = vshrl.u32 %v1285_v12, 5  ;;  %v2848_v18 = vadd.s32 4294967169, %v1381_v2 }
 0x194   :  { %v4362_v10 = vand.u32 8388607, %v1377_v40  ;;  %v1493_v55 = vsel %vm1492_vm5, %v1491_v15, 0  ;;  %vm1275_vm5 = vcmp.lt.s32.totalorder %v4134_v16, 0 }
 0x195   :  { %v1288_v39 = vsub.s32 32, %v1287_v47  ;;  %v1290_v11 = vshll.u32 %v3324_v51, %v1287_v47  ;;  %v1293_v28 = vshll.u32 %v3325_v54, %v1287_v47  ;;  %v1296_v48 = vshll.u32 %v3326_v57, %v1287_v47 }
 0x196   :  { %v3281_v52 = vpop.eup %3280  ;;  %v1299_v38 = vshll.u32 %v3327_v59, %v1287_v47  ;;  %v1302_v12 = vshll.u32 %v3328_v61, %v1287_v47  ;;  %vm1305_vm7 = vcmp.lt.s32.totalorder %v1286_v58, 1  ;;  %vm1307_vm8 = vcmp.lt.s32.totalorder %v1286_v58, 3 }
 0x197   :  { %v3283_v23 = vpop.eup %3282  ;;  %v1269_v6 = vxor.u32 2147483648, %v3281_v52  ;;  %v1291_v32 = vshrl.u32 %v3325_v54, %v1288_v39  ;;  %v1294_v42 = vshrl.u32 %v3326_v57, %v1288_v39  ;;  %v1297_v46 = vshrl.u32 %v3327_v59, %v1288_v39 }
 0x198   :  { %v1266_v20 = vxor.u32 2147483648, %v3283_v23  ;;  %v1300_v22 = vshrl.u32 %v3328_v61, %v1288_v39  ;;  %v1289_v8 = vshrl.u32 %v3324_v51, %v1288_v39  ;;  %vm1308_vm9 = vcmp.lt.s32.totalorder %v1286_v58, 4 }
 0x199   :  { %v1270_v13 = vsel %vm1268_vm4, %v1269_v6, %v3283_v23  ;;  %v2115_v1 = vsel %vm2113_vm2, %v1269_v6, %v3283_v23  ;;  %v1292_v27 = vor.u32 %v1291_v32, %v1290_v11  ;;  %v1295_v62 = vor.u32 %v1294_v42, %v1293_v28 }
 0x19a   :  { %v1267_v50 = vsel %vm1265_vm1, %v3281_v52, %v1266_v20  ;;  %v2112_v37 = vsel %vm2110_vm13, %v3281_v52, %v1266_v20  ;;  %v1298_v44 = vor.u32 %v1297_v46, %v1296_v48  ;;  %v1301_v15 = vor.u32 %v1300_v22, %v1299_v38 }
 0x19b   :  { %v1271_v45 = vsel %vm1264_vm15, %v1267_v50, %v1270_v13  ;;  %v2116_v21 = vsel %vm2109_vm10, %v2112_v37, %v2115_v1  ;;  %v1303_v52 = vshrl.u32 %v3329_v5, %v1288_v39  ;;  %v1309_v20 = vsel %vm1305_vm7, %v1289_v8, %v1292_v27 }
 0x19c   :  { %v1272_v17 = vsel %vm1261_vm12, nan, %v1271_v45  ;;  %v2117_v31 = vsel %vm1261_vm12, nan, %v2116_v21  ;;  %v1310_v11 = vsel %vm1308_vm9, %v1298_v44, 2102212464  ;;  %v1313_v1 = vsel %vm1305_vm7, %v1292_v27, %v1295_v62 }
 0x19d   :  { %v1692_v35 = vsel %vm856_vm3, %v1272_v17, 0.0  ;;  %v2533_v14 = vsel %vm1705_vm6, %v2117_v31, 0.0  ;;  %v1304_v6 = vor.u32 %v1303_v52, %v1302_v12  ;;  %v1311_v13 = vsel %vm1307_vm8, %v1295_v62, %v1310_v11 }
 0x19e   :  { %v1700_v2 = vadd.f32 %v1692_v35, %v851_v29  ;;  %v1314_v28 = vsel %vm1308_vm9, %v1301_v15, 920167782  ;;  %v1317_v29 = vsel %vm1305_vm7, %v1295_v62, %v1298_v44  ;;  %vm1306_vm10 = vcmp.lt.s32.totalorder %v1286_v58, 2 }
 0x19f   :  { %v1315_v47 = vsel %vm1307_vm8, %v1298_v44, %v1314_v28  ;;  %v1318_v39 = vsel %vm1308_vm9, %v1304_v6, 1326507024  ;;  %v4394_v50 = vadd.f32 %v2577_v56, %v4332_v25  ;;  %v1494_v38 = vshrl.u32 %v1493_v55, 5 }
 0x1a0   :  { %v2541_v23 = vadd.f32 %v2533_v14, %v1700_v2  ;;  %v1316_v37 = vsel %vm1306_vm10, %v1313_v1, %v1315_v47  ;;  %v1319_v32 = vsel %vm1307_vm8, %v1301_v15, %v1318_v39  ;;  %v1312_v45 = vsel %vm1306_vm10, %v1309_v20, %v1311_v13 }
 0x1a1   :  { %v1320_v21 = vsel %vm1306_vm10, %v1317_v29, %v1319_v32  ;;  %v4398_v42 = vmul.u32.u64.low %v4357_v53, %v1316_v37  ;;  %v4399_v46 = vmul.u32.u64.high %v4357_v53, %v1316_v37, %v4398_v42  ;;  %v1495_v31 = vand.u32 31, %v1493_v55 }
 0x1a2   :  { %v4390_v48 = vadd.f32 %v2558_v34, %v2541_v23  ;;  %v4402_v34 = vmul.u32.u64.low %v4357_v53, %v1320_v21  ;;  %v4403_v17 = vmul.u32.u64.high %v4357_v53, %v1320_v21, %v4402_v34  ;;  %v1585_v27 = vand.u32 2147483647, %v4147_v30 }
 0x1a3   :  { %v4408_v25 = vshll.u32 %v1489_v41, 8  ;;  %v1385_v56 = vor.u32 8388608, %v4362_v10  ;;  %v1387_v58 = vadd.s32 1, %v2848_v18  ;;  %v1588_v22 = vand.u32 2139095040, %v4147_v30 }
 0x1a4   :  { %v1328_v35 = vmul.u32 %v4357_v53, %v1312_v45  ;;  %v1496_v8 = vsub.s32 32, %v1495_v31  ;;  %vm1513_vm12 = vcmp.lt.s32.totalorder %v1494_v38, 1  ;;  %vm1514_vm13 = vcmp.lt.s32.totalorder %v1494_v38, 2 }
 0x1a5   :  { %v1331_v62 = vadd.s32 1, %v4399_v46  ;;  %v1498_v55 = vshll.u32 %v3324_v51, %v1495_v31  ;;  %v1501_v44 = vshll.u32 %v3325_v54, %v1495_v31  ;;  %v1504_v60 = vshll.u32 %v3326_v57, %v1495_v31 }
 0x1a6   :  { %vm1330_vm2 = vc.u32 %v4403_v17, %v4398_v42  ;;  %v1499_v41 = vshrl.u32 %v3325_v54, %v1496_v8  ;;  %v1507_v18 = vshll.u32 %v3327_v59, %v1495_v31  ;;  %v1510_v10 = vshll.u32 %v3328_v61, %v1495_v31 }
 0x1a7   :  { %v1332_v53 = vsel %vm1330_vm2, %v1331_v62, %v4399_v46  ;;  %v1497_v2 = vshrl.u32 %v3324_v51, %v1496_v8  ;;  %v1502_v15 = vshrl.u32 %v3326_v57, %v1496_v8  ;;  %v1505_v12 = vshrl.u32 %v3327_v59, %v1496_v8 }
 0x1a8   :  { %v1333_v52 = vadd.s32 %v1332_v53, %v1328_v35  ;;  %v1500_v14 = vor.u32 %v1499_v41, %v1498_v55  ;;  %v1508_v23 = vshrl.u32 %v3328_v61, %v1496_v8  ;;  %v1511_v6 = vshrl.u32 %v3329_v5, %v1496_v8 }
 0x1a9   :  { %v1503_v20 = vor.u32 %v1502_v15, %v1501_v44  ;;  %v1506_v11 = vor.u32 %v1505_v12, %v1504_v60  ;;  %vm1516_vm15 = vcmp.lt.s32.totalorder %v1494_v38, 4  ;;  %vm1388_vm0 = vcmp.gt.s32.totalorder %v1387_v58, 0 }
 0x1aa   :  { %v1334_v13 = vadd.s32 536870912, %v1333_v52  ;;  %v1509_v1 = vor.u32 %v1508_v23, %v1507_v18  ;;  %v1512_v28 = vor.u32 %v1511_v6, %v1510_v10  ;;  %v1517_v29 = vsel %vm1513_vm12, %v1497_v2, %v1500_v14 }
 0x1ab   :  { %vm1515_vm11 = vcmp.lt.s32.totalorder %v1494_v38, 3  ;;  %v1518_v47 = vsel %vm1516_vm15, %v1506_v11, 2102212464  ;;  %v1521_v39 = vsel %vm1513_vm12, %v1500_v14, %v1503_v20  ;;  %v1525_v37 = vsel %vm1513_vm12, %v1503_v20, %v1506_v11 }
 0x1ac   :  { %v4430_v32 = vshrl.u32 %v1334_v13, 30  ;;  %v1519_v45 = vsel %vm1515_vm11, %v1503_v20, %v1518_v47  ;;  %v1522_v21 = vsel %vm1516_vm15, %v1509_v1, 920167782  ;;  %v1526_v46 = vsel %vm1516_vm15, %v1512_v28, 1326507024 }
 0x1ad   :  { %v1520_v34 = vsel %vm1514_vm13, %v1517_v29, %v1519_v45  ;;  %v1523_v31 = vsel %vm1515_vm11, %v1506_v11, %v1522_v21  ;;  %v1527_v35 = vsel %vm1515_vm11, %v1509_v1, %v1526_v46  ;;  %v1389_v8 = vsel %vm1388_vm0, %v1387_v58, 0 }
 0x1ae   :  { %v1336_v62 = vshll.u32 %v4430_v32, 30  ;;  %v1524_v55 = vsel %vm1514_vm13, %v1521_v39, %v1523_v31  ;;  %v1528_v44 = vsel %vm1514_vm13, %v1525_v37, %v1527_v35  ;;  %v4437_v60 = vshll.u32 %v1385_v56, 8 }
 0x1af   :  { %v4440_v41 = vmul.u32.u64.low %v4408_v25, %v1528_v44  ;;  %v4441_v18 = vmul.u32.u64.high %v4408_v25, %v1528_v44, %v4440_v41  ;;  %v4444_v10 = vmul.u32.u64.low %v4408_v25, %v1524_v55  ;;  %v4445_v53 = vmul.u32.u64.high %v4408_v25, %v1524_v55, %v4444_v10 }
 0x1b0   :  { %v1329_v2 = vadd.s32 %v4398_v42, %v4403_v17  ;;  %v4448_v15 = vsub.s32 %v1333_v52, %v1336_v62  ;;  %v1536_v58 = vmul.u32 %v4408_v25, %v1520_v34  ;;  %v1391_v12 = vand.u32 31, %v1389_v8 }
 0x1b1   :  { %v4451_v14 = vshrl.u32 %v1389_v8, 5  ;;  %v1589_v38 = vshrl.u32 %v1588_v22, 23  ;;  %v4455_v56 = vand.u32 8388607, %v1585_v27  ;;  %v852_v23 = vsel %vm4230_vm14, %v4134_v16, 0.0 }
 0x1b2   :  { %v1339_v6 = vsub.s32 0, %v4448_v15  ;;  %v1392_v20 = vsub.s32 32, %v1391_v12  ;;  %v1394_v42 = vshll.u32 %v3324_v51, %v1391_v12  ;;  %v1359_v17 = vsub.s32 4, %v4430_v32 }
 0x1b3   :  { %v4464_v25 = vadd.s32 %v4444_v10, %v4441_v18  ;;  %vm1538_vm1 = vc.u32 %v4441_v18, %v4444_v10  ;;  %v1539_v22 = vadd.s32 1, %v4445_v53  ;;  %v1397_v52 = vshll.u32 %v3325_v54, %v1391_v12 }
 0x1b4   :  { %v2845_v11 = vmin.u32 %v1339_v6, %v4448_v15  ;;  %v1395_v13 = vshrl.u32 %v3325_v54, %v1392_v20  ;;  %v1398_v1 = vshrl.u32 %v3326_v57, %v1392_v20  ;;  %v1400_v28 = vshll.u32 %v3326_v57, %v1391_v12 }
 0x1b5   :  { %v1540_v29 = vsel %vm1538_vm1, %v1539_v22, %v4445_v53  ;;  %v1401_v47 = vshrl.u32 %v3327_v59, %v1392_v20  ;;  %v1403_v39 = vshll.u32 %v3327_v59, %v1391_v12  ;;  %v1404_v37 = vshrl.u32 %v3328_v61, %v1392_v20 }
 0x1b6   :  { %v1341_v45 = vclz %v2845_v11  ;;  %v1541_v21 = vadd.s32 %v1540_v29, %v1536_v58  ;;  %v1396_v46 = vor.u32 %v1395_v13, %v1394_v42  ;;  %v1399_v34 = vor.u32 %v1398_v1, %v1397_v52 }
 0x1b7   :  { %v1402_v31 = vor.u32 %v1401_v47, %v1400_v28  ;;  %v1405_v35 = vor.u32 %v1404_v37, %v1403_v39  ;;  %v1406_v8 = vshll.u32 %v3328_v61, %v1391_v12  ;;  %v1407_v62 = vshrl.u32 %v3329_v5, %v1392_v20 }
 0x1b8   :  { %v2846_v55 = vadd.s32 4294967294, %v1341_v45  ;;  %v1542_v44 = vadd.s32 536870912, %v1541_v21  ;;  %v1393_v41 = vshrl.u32 %v3324_v51, %v1392_v20  ;;  %vm1409_vm4 = vcmp.lt.s32.totalorder %v4451_v14, 1 }
 0x1b9   :  { %v1408_v18 = vor.u32 %v1407_v62, %v1406_v8  ;;  %vm1410_vm7 = vcmp.lt.s32.totalorder %v4451_v14, 2  ;;  %vm1411_vm8 = vcmp.lt.s32.totalorder %v4451_v14, 3  ;;  %vm1412_vm9 = vcmp.lt.s32.totalorder %v4451_v14, 4 }
 0x1ba   :  { %vm4487_vm10 = vcmp.le.f32.partialorder %v1273_v24, 0.7853982  ;;  %vm2847_vm12 = vcmp.lt.s32.totalorder %v2846_v55, 0  ;;  %v4491_v53 = vshrl.u32 %v1542_v44, 30  ;;  %v1413_v58 = vsel %vm1409_vm4, %v1393_v41, %v1396_v46 }
 0x1bb   :  { %v1414_v12 = vsel %vm1412_vm9, %v1402_v31, 2102212464  ;;  %v1344_v6 = vsel %vm2847_vm12, 0, %v2846_v55  ;;  %v1417_v42 = vsel %vm1409_vm4, %v1396_v46, %v1399_v34  ;;  %v1418_v24 = vsel %vm1412_vm9, %v1405_v35, 920167782 }
 0x1bc   :  { %v1415_v20 = vsel %vm1411_vm8, %v1399_v34, %v1414_v12  ;;  %v1345_v22 = vsub.s32 32, %v1344_v6  ;;  %v1349_v52 = vsub.s32 4294967266, %v1344_v6  ;;  %v1544_v11 = vshll.u32 %v4491_v53, 30 }
 0x1bd   :  { %v1421_v13 = vsel %vm1409_vm4, %v1399_v34, %v1402_v31  ;;  %v1346_v1 = vshll.u32 %v4448_v15, %v1344_v6  ;;  %v1419_v28 = vsel %vm1411_vm8, %v1402_v31, %v1418_v24  ;;  %v1422_v29 = vsel %vm1412_vm9, %v1408_v18, 1326507024 }
 0x1be   :  { %v2856_v47 = vadd.s32 4294967169, %v1589_v38  ;;  %v1347_v39 = vshrl.u32 %v1329_v2, %v1345_v22  ;;  %v1350_v37 = vadd.s32 127, %v1349_v52  ;;  %v4511_v45 = vsub.s32 %v1541_v21, %v1544_v11 }
 0x1bf   :  { %v1420_v46 = vsel %vm1410_vm7, %v1417_v42, %v1419_v28  ;;  %v1416_v8 = vsel %vm1410_vm7, %v1413_v58, %v1415_v20  ;;  %v1423_v15 = vsel %vm1411_vm8, %v1405_v35, %v1422_v29  ;;  %v1593_v41 = vor.u32 8388608, %v4455_v56 }
 0x1c0   :  { %v4520_v34 = vmul.u32.u64.low %v4437_v60, %v1420_v46  ;;  %v4521_v31 = vmul.u32.u64.high %v4437_v60, %v1420_v46, %v4520_v34  ;;  %v1348_v62 = vor.u32 %v1347_v39, %v1346_v1  ;;  %v1351_v38 = vshll.u32 %v1350_v37, 23 }
 0x1c1   :  { %v1547_v2 = vsub.s32 0, %v4511_v45  ;;  %v1424_v21 = vsel %vm1410_vm7, %v1421_v13, %v1423_v15  ;;  %v1595_v18 = vadd.s32 1, %v2856_v47  ;;  %v1432_v12 = vmul.u32 %v4437_v60, %v1416_v8 }
 0x1c2   :  { %v4528_v55 = vmul.u32.u64.low %v4437_v60, %v1424_v21  ;;  %v4529_v44 = vmul.u32.u64.high %v4437_v60, %v1424_v21, %v4528_v55  ;;  %v1352_v35 = vor.u32 4788187, %v1351_v38  ;;  %v1360_v6 = vsel %vm1275_vm5, %v1359_v17, %v4430_v32 }
 0x1c3   :  { %v2853_v58 = vmin.u32 %v1547_v2, %v4511_v45  ;;  %v1355_v14 = vcvt.s32.f32 %v1348_v62  ;;  %v1435_v20 = vadd.s32 1, %v4521_v31  ;;  %vm1596_vm13 = vcmp.gt.s32.totalorder %v1595_v18, 0 }
 0x1c4   :  { %v4542_v42 = vsel %vm4487_vm10, 0, %v1360_v6  ;;  %v1353_v56 = vand.u32 2147483647, %v1352_v35  ;;  %v1597_v22 = vsel %vm1596_vm13, %v1595_v18, 0  ;;  %vm1434_vm2 = vc.u32 %v4529_v44, %v4520_v34 }
 0x1c5   :  { %v1549_v24 = vclz %v2853_v58  ;;  %v1366_v52 = vadd.s32 3, %v4542_v42  ;;  %v4547_v60 = vshrl.u32 %v1597_v22, 5  ;;  %v1599_v11 = vand.u32 31, %v1597_v22 }
 0x1c6   :  { %v4549_v32 = vshll.u32 %v1593_v41, 8  ;;  %v1356_v17 = vmul.f32 %v1355_v14, %v1353_v56  ;;  %v1436_v1 = vsel %vm1434_vm2, %v1435_v20, %v4521_v31  ;;  %vm1483_vm0 = vcmp.lt.s32.totalorder %v4136_v63, 0 }
 0x1c7   :  { %v2854_v13 = vadd.s32 4294967294, %v1549_v24  ;;  %v4552_v28 = vand.u32 3, %v1366_v52  ;;  %v1437_v29 = vadd.s32 %v1436_v1, %v1432_v12  ;;  %v1600_v47 = vsub.s32 32, %v1599_v11 }
 0x1c8   :  { %v1602_v39 = vshll.u32 %v3324_v51, %v1599_v11  ;;  %v1605_v37 = vshll.u32 %v3325_v54, %v1599_v11  ;;  %v1357_v46 = vxor.u32 2147483648, %v1356_v17  ;;  %v1608_v8 = vshll.u32 %v3326_v57, %v1599_v11 }
 0x1c9   :  { %vm2855_vm15 = vcmp.lt.s32.totalorder %v2854_v13, 0  ;;  %v1611_v15 = vshll.u32 %v3327_v59, %v1599_v11  ;;  %v1438_v38 = vadd.s32 536870912, %v1437_v29  ;;  %v1601_v2 = vshrl.u32 %v3324_v51, %v1600_v47 }
 0x1ca   :  { %v1552_v62 = vsel %vm2855_vm15, 0, %v2854_v13  ;;  %v1603_v31 = vshrl.u32 %v3325_v54, %v1600_v47  ;;  %v1358_v21 = vsel %vm1275_vm5, %v1357_v46, %v1356_v17  ;;  %v1606_v6 = vshrl.u32 %v3326_v57, %v1600_v47 }
 0x1cb   :  { %v1553_v55 = vsub.s32 32, %v1552_v62  ;;  %v1554_v41 = vshll.u32 %v4511_v45, %v1552_v62  ;;  %v1557_v18 = vsub.s32 4294967266, %v1552_v62  ;;  %v1361_v35 = vsel %vm4487_vm10, %v4134_v16, %v1358_v21 }
 0x1cc   :  { %v4566_v58 = vshrl.u32 %v1438_v38, 30  ;;  %v1604_v12 = vor.u32 %v1603_v31, %v1602_v39  ;;  %3284 = vcosq.f32 %v1361_v35  ;;  %v1609_v14 = vshrl.u32 %v3327_v59, %v1600_v47 }
 0x1cd   :  { %v1555_v51 = vshrl.u32 %v4464_v25, %v1553_v55  ;;  %v1558_v54 = vadd.s32 127, %v1557_v18  ;;  %3286 = vsinq.f32 %v1361_v35  ;;  %v1607_v45 = vor.u32 %v1606_v6, %v1605_v37 }
 0x1ce   :  { %v1440_v20 = vshll.u32 %v4566_v58, 30  ;;  %v1612_v56 = vshrl.u32 %v3328_v61, %v1600_v47  ;;  %v1610_v22 = vor.u32 %v1609_v14, %v1608_v8  ;;  %v1614_v52 = vshll.u32 %v3328_v61, %v1599_v11 }
 0x1cf   :  { %v1556_v24 = vor.u32 %v1555_v51, %v1554_v41  ;;  %v1559_v10 = vshll.u32 %v1558_v54, 23  ;;  %v1615_v25 = vshrl.u32 %v3329_v5, %v1600_v47  ;;  %vm1617_vm11 = vcmp.lt.s32.totalorder %v4547_v60, 1 }
 0x1d0   :  { %v4575_v57 = vsub.s32 %v1437_v29, %v1440_v20  ;;  %v1613_v17 = vor.u32 %v1612_v56, %v1611_v15  ;;  %vm4581_vm1 = vcmp.le.f32.partialorder %v1481_v4, 0.7853982  ;;  %vm1618_vm4 = vcmp.lt.s32.totalorder %v4547_v60, 2 }
 0x1d1   :  { %v1560_v13 = vor.u32 4788187, %v1559_v10  ;;  %v1563_v1 = vcvt.s32.f32 %v1556_v24  ;;  %vm1619_vm5 = vcmp.lt.s32.totalorder %v4547_v60, 3  ;;  %v1616_v11 = vor.u32 %v1615_v25, %v1614_v52 }
 0x1d2   :  { %v1443_v61 = vsub.s32 0, %v4575_v57  ;;  %vm1620_vm7 = vcmp.lt.s32.totalorder %v4547_v60, 4  ;;  %v1621_v5 = vsel %vm1617_vm11, %v1601_v2, %v1604_v12  ;;  %v1625_v4 = vsel %vm1617_vm11, %v1604_v12, %v1607_v45 }
 0x1d3   :  { %v1561_v29 = vand.u32 2147483647, %v1560_v13  ;;  %v1622_v47 = vsel %vm1620_vm7, %v1610_v22, 2102212464  ;;  %v1626_v39 = vsel %vm1620_vm7, %v1613_v17, 920167782  ;;  %v1629_v15 = vsel %vm1617_vm11, %v1607_v45, %v1610_v22 }
 0x1d4   :  { %v2849_v37 = vmin.u32 %v1443_v61, %v4575_v57  ;;  %v1623_v46 = vsel %vm1619_vm5, %v1607_v45, %v1622_v47  ;;  %v1627_v8 = vsel %vm1619_vm5, %v1610_v22, %v1626_v39  ;;  %v1630_v2 = vsel %vm1620_vm7, %v1616_v11, 1326507024 }
 0x1d5   :  { %v1564_v62 = vmul.f32 %v1563_v1, %v1561_v29  ;;  %v1628_v38 = vsel %vm1618_vm4, %v1625_v4, %v1627_v8  ;;  %vm1365_vm8 = vweird.f32 %v4134_v16  ;;  %v1631_v21 = vsel %vm1619_vm5, %v1613_v17, %v1630_v2 }
 0x1d6   :  { %v1445_v31 = vclz %v2849_v37  ;;  %v4606_v55 = vmul.u32.u64.low %v4549_v32, %v1628_v38  ;;  %v4607_v41 = vmul.u32.u64.high %v4549_v32, %v1628_v38, %v4606_v55  ;;  %v3285_v18 = vpop.eup %3284  ;;  %v1433_v12 = vadd.s32 %v4520_v34, %v4529_v44 }
 0x1d7   :  { %v1565_v35 = vxor.u32 2147483648, %v1564_v62  ;;  %v1624_v6 = vsel %vm1618_vm4, %v1621_v5, %v1623_v46  ;;  %v1632_v51 = vsel %vm1618_vm4, %v1629_v15, %v1631_v21  ;;  %v3287_v54 = vpop.eup %3286  ;;  %vm1369_vm9 = vcmp.eq.s32.totalorder %v4552_v28, 0 }
 0x1d8   :  { %v2850_v14 = vadd.s32 4294967294, %v1445_v31  ;;  %v4617_v20 = vmul.u32.u64.low %v4549_v32, %v1632_v51  ;;  %v4618_v45 = vmul.u32.u64.high %v4549_v32, %v1632_v51, %v4617_v20  ;;  %v1370_v24 = vxor.u32 2147483648, %v3287_v54 }
 0x1d9   :  { %v1566_v56 = vsel %vm1483_vm0, %v1565_v35, %v1564_v62  ;;  %vm1372_vm10 = vcmp.eq.s32.totalorder %v4552_v28, 2  ;;  %v1373_v34 = vxor.u32 2147483648, %v3285_v18  ;;  %v1643_v60 = vadd.s32 1, %v4607_v41 }
 0x1da   :  { %v1569_v44 = vsel %vm4581_vm1, %v4136_v63, %v1566_v56  ;;  %vm2851_vm12 = vcmp.lt.s32.totalorder %v2850_v14, 0  ;;  %v2211_v10 = vand.u32 3, %v4542_v42  ;;  %v1371_v52 = vsel %vm1369_vm9, %v3285_v18, %v1370_v24 }
 0x1db   :  { %3288 = vcosq.f32 %v1569_v44  ;;  %v1448_v22 = vsel %vm2851_vm12, 0, %v2850_v14  ;;  %v1374_v17 = vsel %vm1372_vm10, %v1373_v34, %v3287_v54  ;;  %vm1368_vm13 = vcmp.lt.s32.totalorder %v4552_v28, 2 }
 0x1dc   :  { %3290 = vsinq.f32 %v1569_v44  ;;  %v1449_v25 = vsub.s32 32, %v1448_v22  ;;  %v1453_v13 = vsub.s32 4294967266, %v1448_v22  ;;  %v1450_v1 = vshll.u32 %v4575_v57, %v1448_v22 }
 0x1dd   :  { %v1640_v61 = vmul.u32 %v4549_v32, %v1624_v6  ;;  %vm1642_vm2 = vc.u32 %v4618_v45, %v4606_v55  ;;  %v1375_v11 = vsel %vm1368_vm13, %v1371_v52, %v1374_v17  ;;  %vm2212_vm15 = vcmp.lt.s32.totalorder %v2211_v10, 2 }
 0x1de   :  { %v1451_v5 = vshrl.u32 %v1433_v12, %v1449_v25  ;;  %v1454_v29 = vadd.s32 127, %v1453_v13  ;;  %v1644_v42 = vsel %vm1642_vm2, %v1643_v60, %v4607_v41  ;;  %v1376_v47 = vsel %vm1365_vm8, nan, %v1375_v11 }
 0x1df   :  { %v1645_v4 = vadd.s32 %v1644_v42, %v1640_v61  ;;  %v1693_v39 = vsel %vm856_vm3, %v1376_v47, 0.0  ;;  %vm2213_vm11 = vcmp.eq.s32.totalorder %v2211_v10, 0  ;;  %vm2216_vm4 = vcmp.eq.s32.totalorder %v2211_v10, 2 }
 0x1e0   :  { %v1452_v28 = vor.u32 %v1451_v5, %v1450_v1  ;;  %v1455_v57 = vshll.u32 %v1454_v29, 23  ;;  %v2215_v32 = vsel %vm2213_vm11, %v3285_v18, %v1370_v24  ;;  %v1701_v46 = vadd.f32 %v1693_v39, %v852_v23 }
 0x1e1   :  { %v1646_v37 = vadd.s32 536870912, %v1645_v4  ;;  %v2218_v8 = vsel %vm2216_vm4, %v1373_v34, %v3287_v54  ;;  %v2551_v15 = vmul.f32 %v4164_v3, %v4134_v16  ;;  %vm4647_vm5 = vcmp.le.f32.partialorder %v1377_v40, 0.7853982 }
 0x1e2   :  { %v1456_v38 = vor.u32 4788187, %v1455_v57  ;;  %v2219_v2 = vsel %vm2212_vm15, %v2215_v32, %v2218_v8  ;;  %v1567_v31 = vsub.s32 4, %v4491_v53  ;;  %vm1379_vm7 = vcmp.lt.s32.totalorder %v4145_v26, 0 }
 0x1e3   :  { %v1459_v21 = vcvt.s32.f32 %v1452_v28  ;;  %v4653_v41 = vshrl.u32 %v1646_v37, 30  ;;  %v2220_v23 = vsel %vm1365_vm8, nan, %v2219_v2  ;;  %v2553_v35 = vmul.f32 %v4199_v19, %v4136_v63 }
 0x1e4   :  { %v1457_v18 = vand.u32 2147483647, %v1456_v38  ;;  %v2534_v3 = vsel %vm1705_vm6, %v2220_v23, 0.0  ;;  %v1568_v40 = vsel %vm1483_vm0, %v1567_v31, %v4491_v53  ;;  %v2589_v6 = vrot.slane %v4390_v48, 4 }
 0x1e5   :  { %v3289_v12 = vpop.eup %3288  ;;  %v1648_v51 = vshll.u32 %v4653_v41, 30  ;;  %v2542_v54 = vadd.f32 %v2534_v3, %v1701_v46  ;;  %v1570_v16 = vsel %vm4581_vm1, 0, %v1568_v40  ;;  %vm4800_vm8 = vcmp.eq.s32.totalorder %v3937_v36, 3 }
 0x1e6   :  { %v3291_v14 = vpop.eup %3290  ;;  %v1460_v20 = vmul.f32 %v1459_v21, %v1457_v18  ;;  %v2559_v56 = vsel %vm4800_vm8, %v2551_v15, 0.0  ;;  %v1574_v24 = vadd.s32 3, %v1570_v16  ;;  %v2417_v34 = vand.u32 3, %v1570_v16  ;;  %vm4801_vm11 = vmmov %vm4800_vm8 }
 0x1e7   :  { %v2579_v53 = vrot.slane %v4394_v50, 2  ;;  %v4671_v44 = vsub.s32 %v1645_v4, %v1648_v51  ;;  %v2567_v19 = vadd.f32 %v2559_v56, %v2542_v54  ;;  %v1578_v60 = vxor.u32 2147483648, %v3291_v14 }
 0x1e8   :  { %v1461_v10 = vxor.u32 2147483648, %v1460_v20  ;;  %v1575_v22 = vand.u32 3, %v1574_v24  ;;  %v1581_v52 = vxor.u32 2147483648, %v3289_v12  ;;  %vm2419_vm0 = vcmp.eq.s32.totalorder %v2417_v34, 0 }
 0x1e9   :  { %v2590_v59 = vadd.f32 %v2589_v6, %v4390_v48  ;;  %v1651_v17 = vsub.s32 0, %v4671_v44  ;;  %vm1573_vm1 = vweird.f32 %v4136_v63  ;;  %v2421_v25 = vsel %vm2419_vm0, %v3289_v12, %v1578_v60 }
 0x1ea   :  { %v1462_v13 = vsel %vm1379_vm7, %v1461_v10, %v1460_v20  ;;  %vm1576_vm9 = vcmp.lt.s32.totalorder %v1575_v22, 2  ;;  %vm1577_vm10 = vcmp.eq.s32.totalorder %v1575_v22, 0  ;;  %vm2422_vm12 = vcmp.eq.s32.totalorder %v2417_v34, 2 }
 0x1eb   :  { %v1465_v1 = vsel %vm4647_vm5, %v4145_v26, %v1462_v13  ;;  %v2857_v61 = vmin.u32 %v1651_v17, %v4671_v44  ;;  %v1579_v11 = vsel %vm1577_vm10, %v3289_v12, %v1578_v60  ;;  %vm1580_vm13 = vcmp.eq.s32.totalorder %v1575_v22, 2 }
 0x1ec   :  { %3292 = vcosq.f32 %v1465_v1  ;;  %v1582_v48 = vsel %vm1580_vm13, %v1581_v52, %v3291_v14  ;;  %v2424_v5 = vsel %vm2422_vm12, %v1581_v52, %v3291_v14  ;;  %v1463_v29 = vsub.s32 4, %v4566_v58  ;;  %vm4804_vm13 = vmmov %vm4801_vm11 }
 0x1ed   :  { %3294 = vsinq.f32 %v1465_v1  ;;  %v1653_v42 = vclz %v2857_v61  ;;  %v1583_v47 = vsel %vm1576_vm9, %v1579_v11, %v1582_v48  ;;  %vm2418_vm2 = vcmp.lt.s32.totalorder %v2417_v34, 2 }
 0x1ee   :  { %v2591_v4 = vrot.slane %v2590_v59, 2  ;;  %v1584_v39 = vsel %vm1573_vm1, nan, %v1583_v47  ;;  %v2425_v28 = vsel %vm2418_vm2, %v2421_v25, %v2424_v5  ;;  %v1464_v57 = vsel %vm1379_vm7, %v1463_v29, %v4566_v58 }
 0x1ef   :  { %v2858_v32 = vadd.s32 4294967294, %v1653_v42  ;;  %v854_v37 = vsel %vm4230_vm14, %v4136_v63, 0.0  ;;  %v1695_v46 = vsel %vm856_vm3, %v1584_v39, 0.0  ;;  %v2426_v8 = vsel %vm1573_vm1, nan, %v2425_v28 }
 0x1f0   :  { %v2587_v15 = vrot.slane %v4342_v0, 1  ;;  %v1703_v38 = vadd.f32 %v1695_v46, %v854_v37  ;;  %v1466_v2 = vsel %vm4647_vm5, 0, %v1464_v57  ;;  %v2552_v58 = vmul.f32 %v4224_v49, %v4145_v26 }
 0x1f1   :  { %v2580_v31 = vadd.f32 %v2579_v53, %v4394_v50  ;;  %vm2859_vm15 = vcmp.lt.s32.totalorder %v2858_v32, 0  ;;  %v2536_v21 = vsel %vm1705_vm6, %v2426_v8, 0.0  ;;  %v1470_v23 = vadd.s32 3, %v1466_v2 }
 0x1f2   :  { %v2592_v18 = vadd.f32 %v2591_v4, %v2590_v59  ;;  %v1656_v3 = vsel %vm2859_vm15, 0, %v2858_v32  ;;  %v2595_v63 = vrot.slane %v2567_v19, 4  ;;  %v2544_v40 = vadd.f32 %v2536_v21, %v1703_v38 }
 0x1f3   :  { %v1641_v12 = vadd.s32 %v4606_v55, %v4618_v45  ;;  %v1657_v6 = vsub.s32 32, %v1656_v3  ;;  %v1661_v62 = vsub.s32 4294967266, %v1656_v3  ;;  %v2561_v51 = vsel %vm4801_vm11, %v2553_v35, 0.0 }
 0x1f4   :  { %v4707_v49 = vadd.f32 %v2561_v51, %v2544_v40  ;;  %v1471_v50 = vand.u32 3, %v1470_v23  ;;  %v2314_v54 = vand.u32 3, %v1466_v2  ;;  %v4712_v16 = vadd.f32 %v2575_v33, %v4335_v9 }
 0x1f5   :  { %v1658_v14 = vshll.u32 %v4671_v44, %v1656_v3  ;;  %v1659_v20 = vshrl.u32 %v1641_v12, %v1657_v6  ;;  %v1662_v56 = vadd.s32 127, %v1661_v62  ;;  %v4716_v55 = vadd.f32 %v2587_v15, %v4342_v0 }
 0x1f6   :  { %v3293_v24 = vpop.eup %3292  ;;  %v2581_v45 = vrot.slane %v2580_v31, 1  ;;  %v2593_v34 = vrot.slane %v2592_v18, 1  ;;  %v2596_v35 = vadd.f32 %v2595_v63, %v2567_v19  ;;  %vm1469_vm4 = vweird.f32 %v4145_v26 }
 0x1f7   :  { %v3295_v53 = vpop.eup %3294  ;;  %v1660_v60 = vor.u32 %v1659_v20, %v1658_v14  ;;  %v1663_v10 = vshll.u32 %v1662_v56, 23  ;;  %v1477_v22 = vxor.u32 2147483648, %v3293_v24  ;;  %vm1476_vm5 = vcmp.eq.s32.totalorder %v1471_v50, 2 }
 0x1f8   :  { %v1474_v52 = vxor.u32 2147483648, %v3295_v53  ;;  %vm2316_vm7 = vcmp.eq.s32.totalorder %v2314_v54, 0  ;;  %vm2319_vm8 = vcmp.eq.s32.totalorder %v2314_v54, 2  ;;  %vm1473_vm0 = vcmp.eq.s32.totalorder %v1471_v50, 0 }
 0x1f9   :  { %v1664_v9 = vor.u32 4788187, %v1663_v10  ;;  %v1478_v33 = vsel %vm1476_vm5, %v1477_v22, %v3295_v53  ;;  %v2321_v44 = vsel %vm2319_vm8, %v1477_v22, %v3295_v53  ;;  %vm1472_vm1 = vcmp.lt.s32.totalorder %v1471_v50, 2 }
 0x1fa   :  { %v1475_v0 = vsel %vm1473_vm0, %v3293_v24, %v1474_v52  ;;  %vm2315_vm9 = vcmp.lt.s32.totalorder %v2314_v54, 2  ;;  %v2318_v59 = vsel %vm2316_vm7, %v3293_v24, %v1474_v52  ;;  %v1667_v19 = vcvt.s32.f32 %v1660_v60  ;;  %vm4805_vm0 = vmmov %vm4804_vm13 }
 0x1fb   :  { %v1665_v17 = vand.u32 2147483647, %v1664_v9  ;;  %v1479_v25 = vsel %vm1472_vm1, %v1475_v0, %v1478_v33  ;;  %v2322_v13 = vsel %vm2315_vm9, %v2318_v59, %v2321_v44  ;;  %v2582_v1 = vadd.f32 %v2581_v45, %v2580_v31 }
 0x1fc   :  { %v2594_v61 = vadd.f32 %v2593_v34, %v2592_v18  ;;  %v1480_v11 = vsel %vm1469_vm4, nan, %v1479_v25  ;;  %v2323_v48 = vsel %vm1469_vm4, nan, %v2322_v13  ;;  %v853_v29 = vsel %vm4230_vm14, %v4145_v26, 0.0 }
 0x1fd   :  { %v1668_v5 = vmul.f32 %v1667_v19, %v1665_v17  ;;  %v1694_v42 = vsel %vm856_vm3, %v1480_v11, 0.0  ;;  %v1671_v47 = vsub.s32 4, %v4653_v41  ;;  %vm1587_vm10 = vcmp.lt.s32.totalorder %v4147_v30, 0 }
 0x1fe   :  { %v1702_v4 = vadd.f32 %v1694_v42, %v853_v29  ;;  %vm4732_vm12 = vcmp.le.f32.partialorder %v1585_v27, 0.7853982  ;;  %v2597_v57 = vrot.slane %v2596_v35, 2  ;;  %v2535_v32 = vsel %vm1705_vm6, %v2323_v48, 0.0 }
 0x1ff   :  { %v1669_v28 = vxor.u32 2147483648, %v1668_v5  ;;  %v2560_v37 = vsel %vm4804_vm13, %v2552_v58, 0.0  ;;  %v2554_v46 = vmul.f32 %v4278_v43, %v4147_v30  ;;  %v2627_v8 = vcombine.low %v4712_v16, %v2582_v1 }
 0x200   :  { %v2543_v26 = vadd.f32 %v2535_v32, %v1702_v4  ;;  %v1672_v27 = vsel %vm1587_vm10, %v1671_v47, %v4653_v41  ;;  %v2628_v38 = vcombine.low %v4716_v55, %v2594_v61  ;;  %v3330_v21 = vmov 1966171168  }
 0x201   :  { %v1670_v15 = vsel %vm1587_vm10, %v1669_v28, %v1668_v5  ;;  %v2632_v23 = vunpack.c.l.s4 %v3330_v21  ;;  %v2598_v18 = vadd.f32 %v2597_v57, %v2596_v35  ;;  %v1674_v43 = vsel %vm4732_vm12, 0, %v1672_v27 }
 0x202   :  { %v1673_v2 = vsel %vm4732_vm12, %v4147_v30, %v1670_v15  ;;  %v2568_v31 = vadd.f32 %v2560_v37, %v2543_v26  ;;  %v1678_v40 = vadd.s32 3, %v1674_v43  ;;  %v2520_v14 = vand.u32 3, %v1674_v43 }
 0x203   :  { %3296 = vcosq.f32 %v1673_v2  ;;  %v2633_v3 = vunpack.c.0.s8 %v2632_v23  ;;  %v2599_v12 = vrot.slane %v2598_v18, 1  ;;  %v2607_v45 = vrot.slane %v4707_v49, 4 }
 0x204   :  { %3298 = vsinq.f32 %v1673_v2  ;;  %v2601_v58 = vrot.slane %v2568_v31, 4  ;;  %v1679_v16 = vand.u32 3, %v1678_v40  ;;  %vm2525_vm11 = vcmp.eq.s32.totalorder %v2520_v14, 2 }
 0x205   :  { %v2636_v41 = vsub.s32 %v2633_v3, %v3937_v36  ;;  %v2600_v20 = vadd.f32 %v2599_v12, %v2598_v18  ;;  %vm2522_vm4 = vcmp.eq.s32.totalorder %v2520_v14, 0  ;;  %vm2521_vm7 = vcmp.lt.s32.totalorder %v2520_v14, 2 }
 0x206   :  { %v2602_v63 = vadd.f32 %v2601_v58, %v2568_v31  ;;  %vm1681_vm2 = vcmp.eq.s32.totalorder %v1679_v16, 0  ;;  %vm1684_vm15 = vcmp.eq.s32.totalorder %v1679_v16, 2  ;;  %vm1680_vm5 = vcmp.lt.s32.totalorder %v1679_v16, 2 }
 0x207   :  { %v2637_v62 = vrot.slane %v2627_v8, %v2636_v41  ;;  %v2644_v51 = vrot.slane %v2628_v38, %v2636_v41  ;;  %vm1677_vm8 = vweird.f32 %v4147_v30  ;;  %v2608_v0 = vadd.f32 %v2607_v45, %v4707_v49 }
 0x208   :  { %v2603_v6 = vrot.slane %v2602_v63, 2  ;;  %v855_v19 = vsel %vm4230_vm14, %v4147_v30, 0.0  ;;  %v2562_v48 = vsel %vm4805_vm0, %v2554_v46, 0.0 }
 0x209   :  { %v2659_v54 = vcombine.low %v2637_v62, %v2644_v51  ;;  %v2609_v61 = vrot.slane %v2608_v0, 2 }
 0x20a   :  { %v2604_v50 = vadd.f32 %v2603_v6, %v2602_v63 }
 0x20b   :  { %v2610_v49 = vadd.f32 %v2609_v61, %v2608_v0  ;;  %v2667_v8 = vrot.slane %v2659_v54, %v2636_v41 }
 0x20c   :  { %v2605_v56 = vrot.slane %v2604_v50, 1 }
 0x20d   :  { %v3297_v24 = vpop.eup %3296  ;;  %v2611_v47 = vrot.slane %v2610_v49, 1 }
 0x20e   :  { %v3299_v55 = vpop.eup %3298  ;;  %v2606_v34 = vadd.f32 %v2605_v56, %v2604_v50  ;;  %v1685_v35 = vxor.u32 2147483648, %v3297_v24 }
 0x20f   :  { %v1682_v53 = vxor.u32 2147483648, %v3299_v55  ;;  %v2612_v30 = vadd.f32 %v2611_v47, %v2610_v49 }
 0x210   :  { %v1686_v60 = vsel %vm1684_vm15, %v1685_v35, %v3299_v55  ;;  %v2527_v10 = vsel %vm2525_vm11, %v1685_v35, %v3299_v55  ;;  %v2629_v22 = vcombine.low %v2600_v20, %v2606_v34 }
 0x211   :  { %v1683_v52 = vsel %vm1681_vm2, %v3297_v24, %v1682_v53  ;;  %v2524_v9 = vsel %vm2522_vm4, %v3297_v24, %v1682_v53 }
 0x212   :  { %v1687_v33 = vsel %vm1680_vm5, %v1683_v52, %v1686_v60  ;;  %v2528_v44 = vsel %vm2521_vm7, %v2524_v9, %v2527_v10  ;;  %v2651_v32 = vrot.slane %v2629_v22, %v2636_v41 }
 0x213   :  { %v1688_v59 = vsel %vm1677_vm8, nan, %v1687_v33  ;;  %v2529_v17 = vsel %vm1677_vm8, nan, %v2528_v44 }
 0x214   :  { %v1696_v25 = vsel %vm856_vm3, %v1688_v59, 0.0  ;;  %v2537_v1 = vsel %vm1705_vm6, %v2529_v17, 0.0 }
 0x215   :  { %v1704_v13 = vadd.f32 %v1696_v25, %v855_v19 }
 0x217   :  { %v2545_v11 = vadd.f32 %v2537_v1, %v1704_v13 }
 0x219   :  { %v2570_v5 = vadd.f32 %v2562_v48, %v2545_v11 }
 0x21b   :  { %v2613_v29 = vrot.slane %v2570_v5, 4 }
 0x21d   :  { %v2614_v42 = vadd.f32 %v2613_v29, %v2570_v5 }
 0x21f   :  { %v2615_v4 = vrot.slane %v2614_v42, 2 }
 0x221   :  { %v2616_v7 = vadd.f32 %v2615_v4, %v2614_v42 }
 0x223   :  { %v2617_v39 = vrot.slane %v2616_v7, 1 }
 0x225   :  { %v2618_v28 = vadd.f32 %v2617_v39, %v2616_v7 }
 0x227   :  { %v2630_v57 = vcombine.low %v2612_v30, %v2618_v28 }
 0x229   :  { %v2658_v26 = vrot.slane %v2630_v57, %v2636_v41 }
 0x22b   :  { %v2660_v37 = vcombine.low %v2651_v32, %v2658_v26 }
 0x22d   :  { %v2674_v15 = vrot.slane %v2660_v37, %v2636_v41 }
 0x22f   :  { %v2675_v36 = vcombine.low %v2667_v8, %v2674_v15 }
 0x231   :  { %2677 = vst [vmem:[#allocation2] sm:$0xff] %v2675_v36 }
 0x232   :  { %3311 = shalt.err (!%p3308_p4)
}
 0x233   :  { %s3312_s17 = scalar_lea.hbm %s4777_s2, 128 }
 0x234   :  { %p3313_p5 = scmp.ne.s32.totalorder %s4777_s2, %s3312_s17  ;;  %p3316_p6 = scmp.lt.u32.totalorder %s3312_s17, %s4777_s2 }
 0x236   :  { %p3318_p7 = pnand %p3316_p6, %p3313_p5 }
 0x238   :  { %3321 = shalt.err (!%p3318_p7)
}
 0x239   :  { %2687 = dma.vmem_to_hbm [thread:$0]  %s2685_s13, 128, %s4777_s2, [#allocation3]  }
 0x23a   :  { %3322 = dma.done.wait [#allocation3], 128  }
 0x23b   :  { %3323 = vsyncadd [#allocation3], 4294967168 }
 0x23c   :  { %2691 = vsyncpa [#allocation3], 1 }

</bundles_post_ra>
